<compile_context>
chip_gen: v7x
topology: tpu7x:2x2x1
jax: 0.10.0
libtpu: 0.0.40
codegen_flags: <defaults>
</compile_context>

<pallas_src>
import math

import jax
import jax.numpy as jnp
from jax.experimental import pallas as pl
from jax.experimental.pallas import tpu as pltpu

# ---------------- small model hyper-parameters (scaled-down module) -----------
B = 2            # batch
H = W = 16       # spatial
DEPTH = 4        # stack depth (module default 120)
HIDDEN = 32      # hidden_dim (module default 1024)
FEAT = 64        # backbone feature dim (ResNet-50 would be 2048)
FFN = 64         # transformer feed-forward dim
T = 8            # report token length
VOCAB = 64       # vocabulary size
MAX_TOKENS = 16  # max_tokens (module default 1024)
KPAD = 32        # conv contraction dim padded 3*3*1=9 -> 32 (MXU aligned)

HO = (H + 2 * 1 - 3) // 2 + 1     # 3x3 / stride-2 conv output spatial (= 8)
NPATCH = HO * HO                  # patches per depth slice (= 64)
DP = DEPTH * NPATCH               # im2col rows per batch element (= 256)
SE = 8                            # encoder sequence (DEPTH+1 = 5) sublane-padded
SD = 16                           # decoder sequence (T+1 = 9) sublane-padded

# -------- packed-weight slab row offsets (all multiples of 16/32 -> aligned) --
# w32 slab: (544, HIDDEN) bf16  -- everything whose output width is HIDDEN
W32_FC1, W32_EQ, W32_EK, W32_EV, W32_EO = 0, 64, 96, 128, 160
W32_EFF2, W32_IMG, W32_TOK = 192, 256, 288
W32_DQ, W32_DK, W32_DV, W32_DO, W32_DFF2 = 352, 384, 416, 448, 480
# w64 slab: (128, 64) bf16      -- everything whose output width is 64
W64_CONV, W64_EFF1, W64_DFF1, W64_HEAD = 0, 32, 64, 96
# b32 slab: (20, HIDDEN) f32    (layer order: bq,bk,bv,bo,ln1g,ln1b,bff2,ln2g,ln2b)
B32_ENC, B32_DEC, B32_LNF = 0, 9, 18
# b64 slab: (4, 64) f32
B64_CONVB, B64_EFF1B, B64_DFF1B, B64_HEADB = 0, 1, 2, 3


# ========================= in-kernel helper functions =========================
def _mm(a, w):
    """MXU matmul: bf16 operands (cast only if needed), f32 accumulation."""
    return jax.lax.dot_general(
        a.astype(jnp.bfloat16), w.astype(jnp.bfloat16),
        dimension_numbers=(((1,), (0,)), ((), ())),
        preferred_element_type=jnp.float32)


def _mm_t(a, b):
    """a @ b.T on the MXU without materializing a transpose."""
    return jax.lax.dot_general(
        a.astype(jnp.bfloat16), b.astype(jnp.bfloat16),
        dimension_numbers=(((1,), (1,)), ((), ())),
        preferred_element_type=jnp.float32)


def _layer_norm(x, g, b, eps=1e-5):
    mu = jnp.mean(x, axis=-1, keepdims=True)
    var = jnp.mean(jnp.square(x - mu), axis=-1, keepdims=True)
    return (x - mu) * jax.lax.rsqrt(var + eps) * g + b


def _transformer_block(x, bias, wq, bq, wk, bk, wv, bv, wo, bo,
                       ln1g, ln1b, wff1, bff1, wff2, bff2, ln2g, ln2b):
    """Post-norm encoder/decoder layer (nhead=1, ReLU FFN), fully in-registers."""
    hid = x.shape[-1]
    xb = x.astype(jnp.bfloat16)                 # one f32->bf16 cast reused by Q/K/V
    q = _mm(xb, wq) + bq
    k = _mm(xb, wk) + bk
    v = _mm(xb, wv) + bv
    s = _mm_t(q, k) * (1.0 / math.sqrt(hid)) + bias
    s_max = jnp.max(s, axis=-1, keepdims=True)
    p = jnp.exp(s - s_max)
    p = p * pl.reciprocal(jnp.sum(p, axis=-1, keepdims=True), approx=True)
    a = _mm(p, v)
    a = _mm(a, wo) + bo
    x = _layer_norm(x + a, ln1g, ln1b)
    f = jnp.maximum(_mm(x, wff1) + bff1, 0.0)
    f = _mm(f, wff2) + bff2
    return _layer_norm(x + f, ln2g, ln2b)


def _layer_slices(w32_ref, w64_ref, b32, b64, qoff, koff, voff, ooff,
                  ff1off, ff2off, boff, ff1brow):
    """Static slab views for one transformer layer; arg order matches
    _transformer_block (static ref row slices are free views)."""
    Hd = HIDDEN
    return (w32_ref[qoff:qoff + Hd, :], b32[boff + 0:boff + 1],
            w32_ref[koff:koff + Hd, :], b32[boff + 1:boff + 2],
            w32_ref[voff:voff + Hd, :], b32[boff + 2:boff + 3],
            w32_ref[ooff:ooff + Hd, :], b32[boff + 3:boff + 4],
            b32[boff + 4:boff + 5], b32[boff + 5:boff + 6],
            w64_ref[ff1off:ff1off + Hd, :], b64[ff1brow:ff1brow + 1],
            w32_ref[ff2off:ff2off + FFN, :], b32[boff + 6:boff + 7],
            b32[boff + 7:boff + 8], b32[boff + 8:boff + 9])


# ======================= single fused forward kernel ==========================
def _fused_kernel(patches_ref, enc_bias_ref, tok_oh_ref, tgt_oh_ref, dec_bias_ref,
                  pool_sel_ref, addin_enc_ref, addin_dec_ref,
                  w64_ref, w32_ref, b32_ref, b64_ref,
                  nll_ref, cnt_ref):
    """One batch element: image encoder -> prefix-LM decoder -> masked-CE sums."""
    f32 = jnp.float32
    b32 = b32_ref[...]
    b64 = b64_ref[...]

    # ------------------------- image encoder phase ---------------------------
    # TODO(synk): pretrained ResNet-50 backbone replaced by a single 3x3/stride-2
    # conv + ReLU + per-depth global-average-pool with deterministic weights.
    feat = jnp.maximum(
        _mm(patches_ref[...], w64_ref[W64_CONV:W64_CONV + KPAD, :])
        + b64[B64_CONVB:B64_CONVB + 1], 0.0)                        # (DP, FEAT)

    # depth-slice mean pool straight into the sublane-padded sequence layout:
    # pool_sel row 0 (cls slot) and rows DEPTH+1.. (padding) are zero.
    pooled = _mm(pool_sel_ref[...], feat)                           # (SE, FEAT)
    # fc1 + [cls; .] + positional embedding (cls/pos/fc1_b folded into addin_enc)
    x = _mm(pooled, w32_ref[W32_FC1:W32_FC1 + FEAT, :]) + addin_enc_ref[...]

    enc_layer = _layer_slices(w32_ref, w64_ref, b32, b64,
                              W32_EQ, W32_EK, W32_EV, W32_EO,
                              W64_EFF1, W32_EFF2, B32_ENC, B64_EFF1B)
    x = _transformer_block(x, enc_bias_ref[...], *enc_layer)        # (SE, HIDDEN)
    cls = x[0:1, :]                                                 # 'cls' pooling

    # ----------------------- decoder + masked-CE phase ------------------------
    # TODO(synk): pretrained LanguageModel report generator replaced by a small
    # synthetic prefix-LM decoder (img_patch_num=1) with deterministic weights.
    img_row = _mm(cls, w32_ref[W32_IMG:W32_IMG + HIDDEN, :])        # (1, HIDDEN)
    tok = _mm(tok_oh_ref[...], w32_ref[W32_TOK:W32_TOK + VOCAB, :])  # (SD, HIDDEN)
    row0 = (jax.lax.broadcasted_iota(jnp.int32, (SD, 1), 0) == 0).astype(f32)
    x = tok + row0 * img_row + addin_dec_ref[...]   # img_b / lm_pos folded in

    dec_layer = _layer_slices(w32_ref, w64_ref, b32, b64,
                              W32_DQ, W32_DK, W32_DV, W32_DO,
                              W64_DFF1, W32_DFF2, B32_DEC, B64_DFF1B)
    x = _transformer_block(x, dec_bias_ref[...], *dec_layer)        # (SD, HIDDEN)
    x = _layer_norm(x, b32[B32_LNF:B32_LNF + 1], b32[B32_LNF + 1:B32_LNF + 2])
    logits = (_mm(x, w64_ref[W64_HEAD:W64_HEAD + HIDDEN, :])
              + b64[B64_HEADB:B64_HEADB + 1])                       # (SD, VOCAB)

    # masked next-token cross entropy -> per-batch partial sums (divide in JAX).
    tgt = tgt_oh_ref[...]                              # rows pre-scaled by loss mask
    rmask = jnp.sum(tgt, axis=-1, keepdims=True)       # (SD, 1), values in {0, 1}
    mx = jnp.max(logits, axis=-1, keepdims=True)
    lse = jnp.log(jnp.sum(jnp.exp(logits - mx), axis=-1, keepdims=True)) + mx
    tsc = jnp.sum(logits * tgt, axis=-1, keepdims=True)
    nll_ref[...] = jnp.sum((lse - tsc) * rmask) * jnp.ones((1, 1), f32)
    cnt_ref[...] = jnp.sum(rmask) * jnp.ones((1, 1), f32)


def pallas_fused_forward(packed, patches, enc_bias, tok_oh, tgt_oh, dec_bias):
    Bi = patches.shape[0]
    const = lambda a: pl.BlockSpec(a.shape, lambda b: (0, 0))  # resident constants
    consts = [packed["pool_sel"], packed["addin_enc"], packed["addin_dec"],
              packed["w64"], packed["w32"], packed["b32"], packed["b64"]]
    nll, cnt = pl.pallas_call(
        _fused_kernel,
        grid=(Bi,),
        in_specs=[pl.BlockSpec((None, DP, KPAD), lambda b: (b, 0, 0)),
                  pl.BlockSpec((None, 1, SE), lambda b: (b, 0, 0)),
                  pl.BlockSpec((None, SD, VOCAB), lambda b: (b, 0, 0)),
                  pl.BlockSpec((None, SD, VOCAB), lambda b: (b, 0, 0)),
                  pl.BlockSpec((None, SD, SD), lambda b: (b, 0, 0))]
                 + [const(a) for a in consts],
        out_specs=[pl.BlockSpec((None, 1, 1), lambda b: (b, 0, 0)),
                   pl.BlockSpec((None, 1, 1), lambda b: (b, 0, 0))],
        out_shape=(jax.ShapeDtypeStruct((Bi, 1, 1), jnp.float32),
                   jax.ShapeDtypeStruct((Bi, 1, 1), jnp.float32)),
        compiler_params=pltpu.CompilerParams(
            dimension_semantics=("parallel",)),    # megacore split on v7x
    )(patches, enc_bias, tok_oh, tgt_oh, dec_bias, *consts)
    return nll, cnt


# ================================ glue / model ================================
def extract_patches_nhwc(x, ksize=3, stride=2, pad=1):
    """im2col for a 3x3/stride-2 conv; x:(N,H,W,C) -> (N,Ho,Wo,k*k*C)."""
    N, Hi, Wi, C = x.shape
    Ho = (Hi + 2 * pad - ksize) // stride + 1
    Wo = (Wi + 2 * pad - ksize) // stride + 1
    xp = jnp.pad(x, ((0, 0), (pad, pad), (pad, pad), (0, 0)))
    cols = []
    for di in range(ksize):
        for dj in range(ksize):
            cols.append(xp[:, di:di + stride * Ho:stride,
                           dj:dj + stride * Wo:stride, :])
    return jnp.concatenate(cols, axis=-1), Ho, Wo


def _encoder_inputs(image, marks):
    """image:(B,1,H,W,D), marks:(B,D) -> bf16 im2col patches + key-padding bias."""
    Bi, C, Hi, Wi, D = image.shape
    # The reference repeats the single channel 3x for the RGB backbone; the three
    # replicas are identical, so replication is folded into the (synthetic) conv
    # weights and only the single-channel image is im2col'ed.
    x = jnp.transpose(image, (0, 4, 1, 2, 3)).reshape(Bi * D, C, Hi, Wi)  # (b d) c h w
    x = jnp.transpose(x, (0, 2, 3, 1))                                    # NHWC
    patches, Ho, Wo = extract_patches_nhwc(x)                             # (N,Ho,Wo,9)
    k_raw = patches.shape[-1]
    patches = patches.reshape(Bi, D * Ho * Wo, k_raw)
    patches = jnp.pad(patches, ((0, 0), (0, 0), (0, KPAD - k_raw)))
    patches = patches.astype(jnp.bfloat16)                                # (B,DP,KPAD)
    keymask = jnp.zeros((Bi, SE), jnp.float32)
    keymask = keymask.at[:, 0].set(1.0).at[:, 1:D + 1].set(marks.astype(jnp.float32))
    enc_bias = ((1.0 - keymask) * (-1e9))[:, None, :]                     # (B,1,SE)
    return patches, enc_bias


def _decoder_inputs(input_ids, attention_mask):
    """Token one-hots, masked next-token targets and prefix-LM attention bias,
    all sublane-padded to SD rows (row 0 = image prefix)."""
    Bi, Ti = input_ids.shape
    oh = jax.nn.one_hot(input_ids, VOCAB, dtype=jnp.float32)              # (B,T,V)
    am = attention_mask.astype(jnp.float32)
    tok_oh = jnp.zeros((Bi, SD, VOCAB), jnp.float32)
    tok_oh = tok_oh.at[:, 1:Ti + 1].set(oh).astype(jnp.bfloat16)
    # row s predicts token s; rows 0 (image), Ti (last token) and padding rows
    # carry a zero target (their rmask is recovered in-kernel as sum over vocab).
    tgt_oh = jnp.zeros((Bi, SD, VOCAB), jnp.float32)
    tgt_oh = tgt_oh.at[:, 1:Ti].set(oh[:, 1:] * am[:, 1:, None])
    keymask = jnp.zeros((Bi, SD), jnp.float32)
    keymask = keymask.at[:, 0].set(1.0).at[:, 1:Ti + 1].set(am)
    causal = (jnp.arange(SD)[None, :] <= jnp.arange(SD)[:, None]).astype(jnp.float32)
    dec_bias = (1.0 - causal[None, :, :] * keymask[:, None, :]) * (-1e9)  # (B,SD,SD)
    return tok_oh, tgt_oh, dec_bias


def med_image_report_model_forward(packed, image, marks, input_ids,
                                   attention_mask, labels=None):
    patches, enc_bias = _encoder_inputs(image, marks)
    tok_oh, tgt_oh, dec_bias = _decoder_inputs(input_ids, attention_mask)
    nll, cnt = pallas_fused_forward(packed, patches, enc_bias,
                                    tok_oh, tgt_oh, dec_bias)
    loss = jnp.sum(nll) / jnp.maximum(jnp.sum(cnt), 1.0)
    # TODO(synk): eval-branch autoregressive report_generator.generate()
    # (greedy/beam decoding) has no clean Pallas equivalent; only the training
    # loss path is implemented.
    return {"loss": loss}


# ================================ parameters ==================================
def _init(key, shape, scale=0.02):
    return scale * jax.random.normal(key, shape, dtype=jnp.float32)


def init_layer(key, hid, ffn):
    k = jax.random.split(key, 6)
    z = lambda n: jnp.zeros((1, n), jnp.float32)
    o = lambda n: jnp.ones((1, n), jnp.float32)
    return dict(
        wq=_init(k[0], (hid, hid)), bq=z(hid),
        wk=_init(k[1], (hid, hid)), bk=z(hid),
        wv=_init(k[2], (hid, hid)), bv=z(hid),
        wo=_init(k[3], (hid, hid)), bo=z(hid),
        ln1_g=o(hid), ln1_b=z(hid),
        wff1=_init(k[4], (hid, ffn)), bff1=z(ffn),
        wff2=_init(k[5], (ffn, hid)), bff2=z(hid),
        ln2_g=o(hid), ln2_b=z(hid),
    )


def init_params(key):
    k = jax.random.split(key, 10)
    # conv weight lives in a zero-padded (KPAD, FEAT) slab (rows 9..31 are zero).
    conv_w = jnp.zeros((KPAD, FEAT), jnp.float32).at[:9, :].set(_init(k[0], (9, FEAT)))
    image_encoder = dict(
        conv_w=conv_w,
        conv_b=jnp.zeros((1, FEAT), jnp.float32),
        fc1_w=_init(k[1], (FEAT, HIDDEN)),
        fc1_b=jnp.zeros((1, HIDDEN), jnp.float32),
        cls_token=_init(k[2], (1, HIDDEN)),
        pos_emb=_init(k[3], (DEPTH + 1, HIDDEN)),
        enc=init_layer(k[4], HIDDEN, FFN),
    )
    report_generator = dict(
        img_w=_init(k[5], (HIDDEN, HIDDEN)),
        img_b=jnp.zeros((1, HIDDEN), jnp.float32),
        tok_emb=_init(k[6], (VOCAB, HIDDEN)),
        lm_pos=_init(k[7], (MAX_TOKENS, HIDDEN)),
        dec=init_layer(k[8], HIDDEN, FFN),
        lnf_g=jnp.ones((1, HIDDEN), jnp.float32),
        lnf_b=jnp.zeros((1, HIDDEN), jnp.float32),
        lm_head_w=_init(k[9], (HIDDEN, VOCAB)),
        lm_head_b=jnp.zeros((1, VOCAB), jnp.float32),
    )
    return dict(image_encoder=image_encoder, report_generator=report_generator)


def _layer_b32_rows(l):
    return [l["bq"], l["bk"], l["bv"], l["bo"], l["ln1_g"], l["ln1_b"],
            l["bff2"], l["ln2_g"], l["ln2_b"]]


def pack_params(p):
    """Pack per-weight params into a few contiguous bf16/f32 HBM slabs plus the
    precomputed pooling-selector / add-in constants used by the fused kernel."""
    enc, gen = p["image_encoder"], p["report_generator"]
    e, d = enc["enc"], gen["dec"]
    w32 = jnp.concatenate(
        [enc["fc1_w"], e["wq"], e["wk"], e["wv"], e["wo"], e["wff2"],
         gen["img_w"], gen["tok_emb"],
         d["wq"], d["wk"], d["wv"], d["wo"], d["wff2"]],
        axis=0).astype(jnp.bfloat16)                                  # (544, HIDDEN)
    w64 = jnp.concatenate(
        [enc["conv_w"], e["wff1"], d["wff1"], gen["lm_head_w"]],
        axis=0).astype(jnp.bfloat16)                                  # (128, 64)
    b32 = jnp.concatenate(
        _layer_b32_rows(e) + _layer_b32_rows(d) + [gen["lnf_g"], gen["lnf_b"]],
        axis=0)                                                       # (20, HIDDEN)
    b64 = jnp.concatenate(
        [enc["conv_b"], e["bff1"], d["bff1"], gen["lm_head_b"]],
        axis=0)                                                       # (4, 64)

    # depth-slice mean-pool selector mapped into the padded encoder sequence:
    # row 0 = cls slot (zero), rows 1..DEPTH = depth slices, rest = padding.
    r = jnp.arange(SE)[:, None]
    c = jnp.arange(DP)[None, :]
    lo = (r - 1) * NPATCH
    pool_sel = jnp.where((r >= 1) & (r <= DEPTH) & (c >= lo) & (c < lo + NPATCH),
                         1.0 / NPATCH, 0.0).astype(jnp.bfloat16)      # (SE, DP)

    # additive slabs: cls token + pos (row 0), pos + fc1_b (rows 1..DEPTH);
    # decoder: img_b (row 0), lm_pos (rows 1..T); padded rows zero.
    addin_enc = jnp.zeros((SE, HIDDEN), jnp.float32)
    addin_enc = addin_enc.at[0].set(enc["cls_token"][0] + enc["pos_emb"][0])
    addin_enc = addin_enc.at[1:DEPTH + 1].set(enc["pos_emb"][1:DEPTH + 1]
                                              + enc["fc1_b"])
    addin_dec = jnp.zeros((SD, HIDDEN), jnp.float32)
    addin_dec = addin_dec.at[0].set(gen["img_b"][0])
    addin_dec = addin_dec.at[1:T + 1].set(gen["lm_pos"][:T])
    return dict(w32=w32, w64=w64, b32=b32, b64=b64, pool_sel=pool_sel,
                addin_enc=addin_enc, addin_dec=addin_dec)


# ==================================== main ====================================
if __name__ == "__main__":
    key = jax.random.PRNGKey(0)
    pkey, ikey, tkey = jax.random.split(key, 3)

    params = init_params(pkey)
    packed = pack_params(params)          # bf16/f32 slabs materialized once in HBM

    image = jax.random.normal(ikey, (B, 1, H, W, DEPTH), dtype=jnp.float32)
    marks = jnp.concatenate(
        [jnp.ones((B, DEPTH - 1), jnp.float32),
         jnp.array([[1.0], [0.0]], jnp.float32)], axis=1)            # (B, DEPTH)
    input_ids = jax.random.randint(tkey, (B, T), 0, VOCAB, dtype=jnp.int32)
    attention_mask = jnp.concatenate(
        [jnp.ones((B, T - 2), jnp.float32),
         jnp.array([[1.0, 1.0], [1.0, 0.0]], jnp.float32)], axis=1)  # (B, T)

    forward = jax.jit(med_image_report_model_forward)
    out = forward(packed, image, marks, input_ids, attention_mask)
    loss = jax.block_until_ready(out["loss"])
    assert jnp.isfinite(loss), f"non-finite loss: {loss}"
    print("KERNEL_OK")
</pallas_src>

<mosaic_0001>
module attributes {stable_mosaic.version = 11 : i64} {
  func.func @_fused_kernel(%arg0: i32, %arg1: memref<1x256x32xbf16, #tpu.memory_space<vmem>>, %arg2: memref<1x1x8xf32, #tpu.memory_space<vmem>>, %arg3: memref<1x16x64xbf16, #tpu.memory_space<vmem>>, %arg4: memref<1x16x64xf32, #tpu.memory_space<vmem>>, %arg5: memref<1x16x16xf32, #tpu.memory_space<vmem>>, %arg6: memref<8x256xbf16, #tpu.memory_space<vmem>>, %arg7: memref<8x32xf32, #tpu.memory_space<vmem>>, %arg8: memref<16x32xf32, #tpu.memory_space<vmem>>, %arg9: memref<128x64xbf16, #tpu.memory_space<vmem>>, %arg10: memref<544x32xbf16, #tpu.memory_space<vmem>>, %arg11: memref<20x32xf32, #tpu.memory_space<vmem>>, %arg12: memref<4x64xf32, #tpu.memory_space<vmem>>, %arg13: memref<1x1x1xf32, #tpu.memory_space<vmem>>, %arg14: memref<1x1x1xf32, #tpu.memory_space<vmem>>) attributes {dimension_semantics = [#tpu.dimension_semantics<parallel>], iteration_bounds = array<i64: 2>, scalar_prefetch = 0 : i64, scratch_operands = 0 : i64, tpu.core_type = #tpu.core_type<tc>, window_params = [{transform_indices = @transform_0, window_bounds = array<i64: 1, 256, 32>}, {transform_indices = @transform_1, window_bounds = array<i64: 1, 1, 8>}, {transform_indices = @transform_2, window_bounds = array<i64: 1, 16, 64>}, {transform_indices = @transform_3, window_bounds = array<i64: 1, 16, 64>}, {transform_indices = @transform_4, window_bounds = array<i64: 1, 16, 16>}, {pipeline_mode = #tpu.pipeline_mode<synchronous>, transform_indices = @transform_5, window_bounds = array<i64: 8, 256>}, {pipeline_mode = #tpu.pipeline_mode<synchronous>, transform_indices = @transform_6, window_bounds = array<i64: 8, 32>}, {pipeline_mode = #tpu.pipeline_mode<synchronous>, transform_indices = @transform_7, window_bounds = array<i64: 16, 32>}, {pipeline_mode = #tpu.pipeline_mode<synchronous>, transform_indices = @transform_8, window_bounds = array<i64: 128, 64>}, {pipeline_mode = #tpu.pipeline_mode<synchronous>, transform_indices = @transform_9, window_bounds = array<i64: 544, 32>}, {pipeline_mode = #tpu.pipeline_mode<synchronous>, transform_indices = @transform_10, window_bounds = array<i64: 20, 32>}, {pipeline_mode = #tpu.pipeline_mode<synchronous>, transform_indices = @transform_11, window_bounds = array<i64: 4, 64>}, {transform_indices = @transform_12, window_bounds = array<i64: 1, 1, 1>}, {transform_indices = @transform_13, window_bounds = array<i64: 1, 1, 1>}]} {
    %c0 = arith.constant 0 : index
    %c0_0 = arith.constant 0 : index
    %0 = vector.load %arg11[%c0, %c0_0] : memref<20x32xf32, #tpu.memory_space<vmem>>, vector<20x32xf32>
    %c0_1 = arith.constant 0 : index
    %c0_2 = arith.constant 0 : index
    %1 = vector.load %arg12[%c0_1, %c0_2] : memref<4x64xf32, #tpu.memory_space<vmem>>, vector<4x64xf32>
    %c0_3 = arith.constant 0 : index
    %c0_4 = arith.constant 0 : index
    %c0_5 = arith.constant 0 : index
    %2 = vector.load %arg1[%c0_3, %c0_4, %c0_5] : memref<1x256x32xbf16, #tpu.memory_space<vmem>>, vector<1x256x32xbf16>
    %3 = vector.shape_cast %2 : vector<1x256x32xbf16> to vector<256x32xbf16>
    %c0_6 = arith.constant 0 : index
    %c0_7 = arith.constant 0 : index
    %4 = vector.load %arg9[%c0_6, %c0_7] : memref<128x64xbf16, #tpu.memory_space<vmem>>, vector<32x64xbf16>
    %cst = arith.constant dense<0.000000e+00> : vector<256x64xf32>
    %5 = tpu.matmul %3, %4, %cst {dimension_numbers = #tpu.dot_dimension_numbers<[1], [0], [0], [1], [0, 0, 1, 1], [], []>} : vector<256x32xbf16>, vector<32x64xbf16>, vector<256x64xf32> -> vector<256x64xf32>
    %6 = vector.extract_strided_slice %1 {offsets = [0, 0], sizes = [1, 64], strides = [1, 1]} : vector<4x64xf32> to vector<1x64xf32>
    %7 = vector.broadcast %6 : vector<1x64xf32> to vector<256x64xf32>
    %8 = arith.addf %5, %7 : vector<256x64xf32>
    %cst_8 = arith.constant 0.000000e+00 : f32
    %9 = vector.broadcast %cst_8 : f32 to vector<256x64xf32>
    %10 = arith.maximumf %8, %9 : vector<256x64xf32>
    %c0_9 = arith.constant 0 : index
    %c0_10 = arith.constant 0 : index
    %11 = vector.load %arg6[%c0_9, %c0_10] : memref<8x256xbf16, #tpu.memory_space<vmem>>, vector<8x256xbf16>
    %12 = arith.truncf %10 : vector<256x64xf32> to vector<256x64xbf16>
    %cst_11 = arith.constant dense<0.000000e+00> : vector<8x64xf32>
    %13 = tpu.matmul %11, %12, %cst_11 {dimension_numbers = #tpu.dot_dimension_numbers<[1], [0], [0], [1], [0, 0, 1, 1], [], []>} : vector<8x256xbf16>, vector<256x64xbf16>, vector<8x64xf32> -> vector<8x64xf32>
    %c0_12 = arith.constant 0 : index
    %c0_13 = arith.constant 0 : index
    %14 = vector.load %arg10[%c0_12, %c0_13] : memref<544x32xbf16, #tpu.memory_space<vmem>>, vector<64x32xbf16>
    %15 = arith.truncf %13 : vector<8x64xf32> to vector<8x64xbf16>
    %cst_14 = arith.constant dense<0.000000e+00> : vector<8x32xf32>
    %16 = tpu.matmul %15, %14, %cst_14 {dimension_numbers = #tpu.dot_dimension_numbers<[1], [0], [0], [1], [0, 0, 1, 1], [], []>} : vector<8x64xbf16>, vector<64x32xbf16>, vector<8x32xf32> -> vector<8x32xf32>
    %c0_15 = arith.constant 0 : index
    %c0_16 = arith.constant 0 : index
    %17 = vector.load %arg7[%c0_15, %c0_16] : memref<8x32xf32, #tpu.memory_space<vmem>>, vector<8x32xf32>
    %18 = arith.addf %16, %17 : vector<8x32xf32>
    %c64 = arith.constant 64 : index
    %c0_17 = arith.constant 0 : index
    %19 = vector.load %arg10[%c64, %c0_17] : memref<544x32xbf16, #tpu.memory_space<vmem>>, vector<32x32xbf16>
    %20 = vector.extract_strided_slice %0 {offsets = [0, 0], sizes = [1, 32], strides = [1, 1]} : vector<20x32xf32> to vector<1x32xf32>
    %c96 = arith.constant 96 : index
    %c0_18 = arith.constant 0 : index
    %21 = vector.load %arg10[%c96, %c0_18] : memref<544x32xbf16, #tpu.memory_space<vmem>>, vector<32x32xbf16>
    %22 = vector.extract_strided_slice %0 {offsets = [1, 0], sizes = [1, 32], strides = [1, 1]} : vector<20x32xf32> to vector<1x32xf32>
    %c128 = arith.constant 128 : index
    %c0_19 = arith.constant 0 : index
    %23 = vector.load %arg10[%c128, %c0_19] : memref<544x32xbf16, #tpu.memory_space<vmem>>, vector<32x32xbf16>
    %24 = vector.extract_strided_slice %0 {offsets = [2, 0], sizes = [1, 32], strides = [1, 1]} : vector<20x32xf32> to vector<1x32xf32>
    %c160 = arith.constant 160 : index
    %c0_20 = arith.constant 0 : index
    %25 = vector.load %arg10[%c160, %c0_20] : memref<544x32xbf16, #tpu.memory_space<vmem>>, vector<32x32xbf16>
    %26 = vector.extract_strided_slice %0 {offsets = [3, 0], sizes = [1, 32], strides = [1, 1]} : vector<20x32xf32> to vector<1x32xf32>
    %27 = vector.extract_strided_slice %0 {offsets = [4, 0], sizes = [1, 32], strides = [1, 1]} : vector<20x32xf32> to vector<1x32xf32>
    %28 = vector.extract_strided_slice %0 {offsets = [5, 0], sizes = [1, 32], strides = [1, 1]} : vector<20x32xf32> to vector<1x32xf32>
    %c32 = arith.constant 32 : index
    %c0_21 = arith.constant 0 : index
    %29 = vector.load %arg9[%c32, %c0_21] : memref<128x64xbf16, #tpu.memory_space<vmem>>, vector<32x64xbf16>
    %30 = vector.extract_strided_slice %1 {offsets = [1, 0], sizes = [1, 64], strides = [1, 1]} : vector<4x64xf32> to vector<1x64xf32>
    %c192 = arith.constant 192 : index
    %c0_22 = arith.constant 0 : index
    %31 = vector.load %arg10[%c192, %c0_22] : memref<544x32xbf16, #tpu.memory_space<vmem>>, vector<64x32xbf16>
    %32 = vector.extract_strided_slice %0 {offsets = [6, 0], sizes = [1, 32], strides = [1, 1]} : vector<20x32xf32> to vector<1x32xf32>
    %33 = vector.extract_strided_slice %0 {offsets = [7, 0], sizes = [1, 32], strides = [1, 1]} : vector<20x32xf32> to vector<1x32xf32>
    %34 = vector.extract_strided_slice %0 {offsets = [8, 0], sizes = [1, 32], strides = [1, 1]} : vector<20x32xf32> to vector<1x32xf32>
    %c0_23 = arith.constant 0 : index
    %c0_24 = arith.constant 0 : index
    %c0_25 = arith.constant 0 : index
    %35 = vector.load %arg2[%c0_23, %c0_24, %c0_25] : memref<1x1x8xf32, #tpu.memory_space<vmem>>, vector<1x1x8xf32>
    %36 = vector.shape_cast %35 : vector<1x1x8xf32> to vector<1x8xf32>
    %37 = arith.truncf %18 : vector<8x32xf32> to vector<8x32xbf16>
    %cst_26 = arith.constant dense<0.000000e+00> : vector<8x32xf32>
    %38 = tpu.matmul %37, %19, %cst_26 {dimension_numbers = #tpu.dot_dimension_numbers<[1], [0], [0], [1], [0, 0, 1, 1], [], []>} : vector<8x32xbf16>, vector<32x32xbf16>, vector<8x32xf32> -> vector<8x32xf32>
    %39 = vector.broadcast %20 : vector<1x32xf32> to vector<8x32xf32>
    %40 = arith.addf %38, %39 : vector<8x32xf32>
    %cst_27 = arith.constant dense<0.000000e+00> : vector<8x32xf32>
    %41 = tpu.matmul %37, %21, %cst_27 {dimension_numbers = #tpu.dot_dimension_numbers<[1], [0], [0], [1], [0, 0, 1, 1], [], []>} : vector<8x32xbf16>, vector<32x32xbf16>, vector<8x32xf32> -> vector<8x32xf32>
    %42 = vector.broadcast %22 : vector<1x32xf32> to vector<8x32xf32>
    %43 = arith.addf %41, %42 : vector<8x32xf32>
    %cst_28 = arith.constant dense<0.000000e+00> : vector<8x32xf32>
    %44 = tpu.matmul %37, %23, %cst_28 {dimension_numbers = #tpu.dot_dimension_numbers<[1], [0], [0], [1], [0, 0, 1, 1], [], []>} : vector<8x32xbf16>, vector<32x32xbf16>, vector<8x32xf32> -> vector<8x32xf32>
    %45 = vector.broadcast %24 : vector<1x32xf32> to vector<8x32xf32>
    %46 = arith.addf %44, %45 : vector<8x32xf32>
    %47 = arith.truncf %40 : vector<8x32xf32> to vector<8x32xbf16>
    %48 = arith.truncf %43 : vector<8x32xf32> to vector<8x32xbf16>
    %cst_29 = arith.constant dense<0.000000e+00> : vector<8x8xf32>
    %49 = tpu.matmul %47, %48, %cst_29 {dimension_numbers = #tpu.dot_dimension_numbers<[1], [1], [0], [0], [0, 0, 1, 0], [], []>} : vector<8x32xbf16>, vector<8x32xbf16>, vector<8x8xf32> -> vector<8x8xf32>
    %cst_30 = arith.constant 0.176776692 : f32
    %50 = vector.broadcast %cst_30 : f32 to vector<8x8xf32>
    %51 = arith.mulf %49, %50 : vector<8x8xf32>
    %52 = vector.broadcast %36 : vector<1x8xf32> to vector<8x8xf32>
    %53 = arith.addf %51, %52 : vector<8x8xf32>
    %cst_31 = arith.constant dense<0xFF800000> : vector<8xf32>
    %54 = vector.multi_reduction <maximumf>, %53, %cst_31 [1] : vector<8x8xf32> to vector<8xf32>
    %55 = vector.shape_cast %54 : vector<8xf32> to vector<8x1xf32>
    %56 = vector.broadcast %55 : vector<8x1xf32> to vector<8x8xf32>
    %57 = arith.subf %53, %56 : vector<8x8xf32>
    %58 = math.exp %57 : vector<8x8xf32>
    %cst_32 = arith.constant dense<0.000000e+00> : vector<8xf32>
    %59 = vector.multi_reduction <add>, %58, %cst_32 [1] : vector<8x8xf32> to vector<8xf32>
    %60 = vector.shape_cast %59 : vector<8xf32> to vector<8x1xf32>
    %61 = tpu.reciprocal %60 {approx = true} : vector<8x1xf32> -> vector<8x1xf32>
    %62 = vector.broadcast %61 : vector<8x1xf32> to vector<8x8xf32>
    %63 = arith.mulf %58, %62 : vector<8x8xf32>
    %64 = arith.truncf %63 : vector<8x8xf32> to vector<8x8xbf16>
    %65 = arith.truncf %46 : vector<8x32xf32> to vector<8x32xbf16>
    %cst_33 = arith.constant dense<0.000000e+00> : vector<8x32xf32>
    %66 = tpu.matmul %64, %65, %cst_33 {dimension_numbers = #tpu.dot_dimension_numbers<[1], [0], [0], [1], [0, 0, 1, 1], [], []>} : vector<8x8xbf16>, vector<8x32xbf16>, vector<8x32xf32> -> vector<8x32xf32>
    %67 = arith.truncf %66 : vector<8x32xf32> to vector<8x32xbf16>
    %cst_34 = arith.constant dense<0.000000e+00> : vector<8x32xf32>
    %68 = tpu.matmul %67, %25, %cst_34 {dimension_numbers = #tpu.dot_dimension_numbers<[1], [0], [0], [1], [0, 0, 1, 1], [], []>} : vector<8x32xbf16>, vector<32x32xbf16>, vector<8x32xf32> -> vector<8x32xf32>
    %69 = vector.broadcast %26 : vector<1x32xf32> to vector<8x32xf32>
    %70 = arith.addf %68, %69 : vector<8x32xf32>
    %71 = arith.addf %18, %70 : vector<8x32xf32>
    %cst_35 = arith.constant dense<0.000000e+00> : vector<8xf32>
    %72 = vector.multi_reduction <add>, %71, %cst_35 [1] : vector<8x32xf32> to vector<8xf32>
    %73 = vector.shape_cast %72 : vector<8xf32> to vector<8x1xf32>
    %cst_36 = arith.constant 3.200000e+01 : f32
    %74 = vector.broadcast %cst_36 : f32 to vector<8x1xf32>
    %75 = arith.divf %73, %74 : vector<8x1xf32>
    %76 = vector.broadcast %75 : vector<8x1xf32> to vector<8x32xf32>
    %77 = arith.subf %71, %76 : vector<8x32xf32>
    %78 = arith.mulf %77, %77 : vector<8x32xf32>
    %cst_37 = arith.constant dense<0.000000e+00> : vector<8xf32>
    %79 = vector.multi_reduction <add>, %78, %cst_37 [1] : vector<8x32xf32> to vector<8xf32>
    %80 = vector.shape_cast %79 : vector<8xf32> to vector<8x1xf32>
    %cst_38 = arith.constant 3.200000e+01 : f32
    %81 = vector.broadcast %cst_38 : f32 to vector<8x1xf32>
    %82 = arith.divf %80, %81 : vector<8x1xf32>
    %83 = vector.broadcast %75 : vector<8x1xf32> to vector<8x32xf32>
    %84 = arith.subf %71, %83 : vector<8x32xf32>
    %cst_39 = arith.constant 9.99999974E-6 : f32
    %85 = vector.broadcast %cst_39 : f32 to vector<8x1xf32>
    %86 = arith.addf %82, %85 : vector<8x1xf32>
    %87 = math.rsqrt %86 : vector<8x1xf32>
    %88 = vector.broadcast %87 : vector<8x1xf32> to vector<8x32xf32>
    %89 = arith.mulf %84, %88 : vector<8x32xf32>
    %90 = vector.broadcast %27 : vector<1x32xf32> to vector<8x32xf32>
    %91 = arith.mulf %89, %90 : vector<8x32xf32>
    %92 = vector.broadcast %28 : vector<1x32xf32> to vector<8x32xf32>
    %93 = arith.addf %91, %92 : vector<8x32xf32>
    %94 = arith.truncf %93 : vector<8x32xf32> to vector<8x32xbf16>
    %cst_40 = arith.constant dense<0.000000e+00> : vector<8x64xf32>
    %95 = tpu.matmul %94, %29, %cst_40 {dimension_numbers = #tpu.dot_dimension_numbers<[1], [0], [0], [1], [0, 0, 1, 1], [], []>} : vector<8x32xbf16>, vector<32x64xbf16>, vector<8x64xf32> -> vector<8x64xf32>
    %96 = vector.broadcast %30 : vector<1x64xf32> to vector<8x64xf32>
    %97 = arith.addf %95, %96 : vector<8x64xf32>
    %cst_41 = arith.constant 0.000000e+00 : f32
    %98 = vector.broadcast %cst_41 : f32 to vector<8x64xf32>
    %99 = arith.maximumf %97, %98 : vector<8x64xf32>
    %100 = arith.truncf %99 : vector<8x64xf32> to vector<8x64xbf16>
    %cst_42 = arith.constant dense<0.000000e+00> : vector<8x32xf32>
    %101 = tpu.matmul %100, %31, %cst_42 {dimension_numbers = #tpu.dot_dimension_numbers<[1], [0], [0], [1], [0, 0, 1, 1], [], []>} : vector<8x64xbf16>, vector<64x32xbf16>, vector<8x32xf32> -> vector<8x32xf32>
    %102 = vector.broadcast %32 : vector<1x32xf32> to vector<8x32xf32>
    %103 = arith.addf %101, %102 : vector<8x32xf32>
    %104 = arith.addf %93, %103 : vector<8x32xf32>
    %cst_43 = arith.constant dense<0.000000e+00> : vector<8xf32>
    %105 = vector.multi_reduction <add>, %104, %cst_43 [1] : vector<8x32xf32> to vector<8xf32>
    %106 = vector.shape_cast %105 : vector<8xf32> to vector<8x1xf32>
    %cst_44 = arith.constant 3.200000e+01 : f32
    %107 = vector.broadcast %cst_44 : f32 to vector<8x1xf32>
    %108 = arith.divf %106, %107 : vector<8x1xf32>
    %109 = vector.broadcast %108 : vector<8x1xf32> to vector<8x32xf32>
    %110 = arith.subf %104, %109 : vector<8x32xf32>
    %111 = arith.mulf %110, %110 : vector<8x32xf32>
    %cst_45 = arith.constant dense<0.000000e+00> : vector<8xf32>
    %112 = vector.multi_reduction <add>, %111, %cst_45 [1] : vector<8x32xf32> to vector<8xf32>
    %113 = vector.shape_cast %112 : vector<8xf32> to vector<8x1xf32>
    %cst_46 = arith.constant 3.200000e+01 : f32
    %114 = vector.broadcast %cst_46 : f32 to vector<8x1xf32>
    %115 = arith.divf %113, %114 : vector<8x1xf32>
    %116 = vector.broadcast %108 : vector<8x1xf32> to vector<8x32xf32>
    %117 = arith.subf %104, %116 : vector<8x32xf32>
    %cst_47 = arith.constant 9.99999974E-6 : f32
    %118 = vector.broadcast %cst_47 : f32 to vector<8x1xf32>
    %119 = arith.addf %115, %118 : vector<8x1xf32>
    %120 = math.rsqrt %119 : vector<8x1xf32>
    %121 = vector.broadcast %120 : vector<8x1xf32> to vector<8x32xf32>
    %122 = arith.mulf %117, %121 : vector<8x32xf32>
    %123 = vector.broadcast %33 : vector<1x32xf32> to vector<8x32xf32>
    %124 = arith.mulf %122, %123 : vector<8x32xf32>
    %125 = vector.broadcast %34 : vector<1x32xf32> to vector<8x32xf32>
    %126 = arith.addf %124, %125 : vector<8x32xf32>
    %127 = vector.extract_strided_slice %126 {offsets = [0, 0], sizes = [1, 32], strides = [1, 1]} : vector<8x32xf32> to vector<1x32xf32>
    %c256 = arith.constant 256 : index
    %c0_48 = arith.constant 0 : index
    %128 = vector.load %arg10[%c256, %c0_48] : memref<544x32xbf16, #tpu.memory_space<vmem>>, vector<32x32xbf16>
    %129 = arith.truncf %127 : vector<1x32xf32> to vector<1x32xbf16>
    %cst_49 = arith.constant dense<0.000000e+00> : vector<1x32xf32>
    %130 = tpu.matmul %129, %128, %cst_49 {dimension_numbers = #tpu.dot_dimension_numbers<[1], [0], [0], [1], [0, 0, 1, 1], [], []>} : vector<1x32xbf16>, vector<32x32xbf16>, vector<1x32xf32> -> vector<1x32xf32>
    %c0_50 = arith.constant 0 : index
    %c0_51 = arith.constant 0 : index
    %c0_52 = arith.constant 0 : index
    %131 = vector.load %arg3[%c0_50, %c0_51, %c0_52] : memref<1x16x64xbf16, #tpu.memory_space<vmem>>, vector<1x16x64xbf16>
    %132 = vector.shape_cast %131 : vector<1x16x64xbf16> to vector<16x64xbf16>
    %c288 = arith.constant 288 : index
    %c0_53 = arith.constant 0 : index
    %133 = vector.load %arg10[%c288, %c0_53] : memref<544x32xbf16, #tpu.memory_space<vmem>>, vector<64x32xbf16>
    %cst_54 = arith.constant dense<0.000000e+00> : vector<16x32xf32>
    %134 = tpu.matmul %132, %133, %cst_54 {dimension_numbers = #tpu.dot_dimension_numbers<[1], [0], [0], [1], [0, 0, 1, 1], [], []>} : vector<16x64xbf16>, vector<64x32xbf16>, vector<16x32xf32> -> vector<16x32xf32>
    %135 = tpu.iota {dimensions = array<i32: 0>} : vector<16x1xi32>
    %c0_i32 = arith.constant 0 : i32
    %136 = vector.broadcast %c0_i32 : i32 to vector<16x1xi32>
    %137 = arith.cmpi eq, %135, %136 : vector<16x1xi32>
    %138 = arith.extui %137 : vector<16x1xi1> to vector<16x1xi32>
    %139 = arith.sitofp %138 : vector<16x1xi32> to vector<16x1xf32>
    %140 = vector.broadcast %139 : vector<16x1xf32> to vector<16x32xf32>
    %141 = vector.broadcast %130 : vector<1x32xf32> to vector<16x32xf32>
    %142 = arith.mulf %140, %141 : vector<16x32xf32>
    %143 = arith.addf %134, %142 : vector<16x32xf32>
    %c0_55 = arith.constant 0 : index
    %c0_56 = arith.constant 0 : index
    %144 = vector.load %arg8[%c0_55, %c0_56] : memref<16x32xf32, #tpu.memory_space<vmem>>, vector<16x32xf32>
    %145 = arith.addf %143, %144 : vector<16x32xf32>
    %c352 = arith.constant 352 : index
    %c0_57 = arith.constant 0 : index
    %146 = vector.load %arg10[%c352, %c0_57] : memref<544x32xbf16, #tpu.memory_space<vmem>>, vector<32x32xbf16>
    %147 = vector.extract_strided_slice %0 {offsets = [9, 0], sizes = [1, 32], strides = [1, 1]} : vector<20x32xf32> to vector<1x32xf32>
    %c384 = arith.constant 384 : index
    %c0_58 = arith.constant 0 : index
    %148 = vector.load %arg10[%c384, %c0_58] : memref<544x32xbf16, #tpu.memory_space<vmem>>, vector<32x32xbf16>
    %149 = vector.extract_strided_slice %0 {offsets = [10, 0], sizes = [1, 32], strides = [1, 1]} : vector<20x32xf32> to vector<1x32xf32>
    %c416 = arith.constant 416 : index
    %c0_59 = arith.constant 0 : index
    %150 = vector.load %arg10[%c416, %c0_59] : memref<544x32xbf16, #tpu.memory_space<vmem>>, vector<32x32xbf16>
    %151 = vector.extract_strided_slice %0 {offsets = [11, 0], sizes = [1, 32], strides = [1, 1]} : vector<20x32xf32> to vector<1x32xf32>
    %c448 = arith.constant 448 : index
    %c0_60 = arith.constant 0 : index
    %152 = vector.load %arg10[%c448, %c0_60] : memref<544x32xbf16, #tpu.memory_space<vmem>>, vector<32x32xbf16>
    %153 = vector.extract_strided_slice %0 {offsets = [12, 0], sizes = [1, 32], strides = [1, 1]} : vector<20x32xf32> to vector<1x32xf32>
    %154 = vector.extract_strided_slice %0 {offsets = [13, 0], sizes = [1, 32], strides = [1, 1]} : vector<20x32xf32> to vector<1x32xf32>
    %155 = vector.extract_strided_slice %0 {offsets = [14, 0], sizes = [1, 32], strides = [1, 1]} : vector<20x32xf32> to vector<1x32xf32>
    %c64_61 = arith.constant 64 : index
    %c0_62 = arith.constant 0 : index
    %156 = vector.load %arg9[%c64_61, %c0_62] : memref<128x64xbf16, #tpu.memory_space<vmem>>, vector<32x64xbf16>
    %157 = vector.extract_strided_slice %1 {offsets = [2, 0], sizes = [1, 64], strides = [1, 1]} : vector<4x64xf32> to vector<1x64xf32>
    %c480 = arith.constant 480 : index
    %c0_63 = arith.constant 0 : index
    %158 = vector.load %arg10[%c480, %c0_63] : memref<544x32xbf16, #tpu.memory_space<vmem>>, vector<64x32xbf16>
    %159 = vector.extract_strided_slice %0 {offsets = [15, 0], sizes = [1, 32], strides = [1, 1]} : vector<20x32xf32> to vector<1x32xf32>
    %160 = vector.extract_strided_slice %0 {offsets = [16, 0], sizes = [1, 32], strides = [1, 1]} : vector<20x32xf32> to vector<1x32xf32>
    %161 = vector.extract_strided_slice %0 {offsets = [17, 0], sizes = [1, 32], strides = [1, 1]} : vector<20x32xf32> to vector<1x32xf32>
    %c0_64 = arith.constant 0 : index
    %c0_65 = arith.constant 0 : index
    %c0_66 = arith.constant 0 : index
    %162 = vector.load %arg5[%c0_64, %c0_65, %c0_66] : memref<1x16x16xf32, #tpu.memory_space<vmem>>, vector<1x16x16xf32>
    %163 = vector.shape_cast %162 : vector<1x16x16xf32> to vector<16x16xf32>
    %164 = arith.truncf %145 : vector<16x32xf32> to vector<16x32xbf16>
    %cst_67 = arith.constant dense<0.000000e+00> : vector<16x32xf32>
    %165 = tpu.matmul %164, %146, %cst_67 {dimension_numbers = #tpu.dot_dimension_numbers<[1], [0], [0], [1], [0, 0, 1, 1], [], []>} : vector<16x32xbf16>, vector<32x32xbf16>, vector<16x32xf32> -> vector<16x32xf32>
    %166 = vector.broadcast %147 : vector<1x32xf32> to vector<16x32xf32>
    %167 = arith.addf %165, %166 : vector<16x32xf32>
    %cst_68 = arith.constant dense<0.000000e+00> : vector<16x32xf32>
    %168 = tpu.matmul %164, %148, %cst_68 {dimension_numbers = #tpu.dot_dimension_numbers<[1], [0], [0], [1], [0, 0, 1, 1], [], []>} : vector<16x32xbf16>, vector<32x32xbf16>, vector<16x32xf32> -> vector<16x32xf32>
    %169 = vector.broadcast %149 : vector<1x32xf32> to vector<16x32xf32>
    %170 = arith.addf %168, %169 : vector<16x32xf32>
    %cst_69 = arith.constant dense<0.000000e+00> : vector<16x32xf32>
    %171 = tpu.matmul %164, %150, %cst_69 {dimension_numbers = #tpu.dot_dimension_numbers<[1], [0], [0], [1], [0, 0, 1, 1], [], []>} : vector<16x32xbf16>, vector<32x32xbf16>, vector<16x32xf32> -> vector<16x32xf32>
    %172 = vector.broadcast %151 : vector<1x32xf32> to vector<16x32xf32>
    %173 = arith.addf %171, %172 : vector<16x32xf32>
    %174 = arith.truncf %167 : vector<16x32xf32> to vector<16x32xbf16>
    %175 = arith.truncf %170 : vector<16x32xf32> to vector<16x32xbf16>
    %cst_70 = arith.constant dense<0.000000e+00> : vector<16x16xf32>
    %176 = tpu.matmul %174, %175, %cst_70 {dimension_numbers = #tpu.dot_dimension_numbers<[1], [1], [0], [0], [0, 0, 1, 0], [], []>} : vector<16x32xbf16>, vector<16x32xbf16>, vector<16x16xf32> -> vector<16x16xf32>
    %cst_71 = arith.constant 0.176776692 : f32
    %177 = vector.broadcast %cst_71 : f32 to vector<16x16xf32>
    %178 = arith.mulf %176, %177 : vector<16x16xf32>
    %179 = arith.addf %178, %163 : vector<16x16xf32>
    %cst_72 = arith.constant dense<0xFF800000> : vector<16xf32>
    %180 = vector.multi_reduction <maximumf>, %179, %cst_72 [1] : vector<16x16xf32> to vector<16xf32>
    %181 = vector.shape_cast %180 : vector<16xf32> to vector<16x1xf32>
    %182 = vector.broadcast %181 : vector<16x1xf32> to vector<16x16xf32>
    %183 = arith.subf %179, %182 : vector<16x16xf32>
    %184 = math.exp %183 : vector<16x16xf32>
    %cst_73 = arith.constant dense<0.000000e+00> : vector<16xf32>
    %185 = vector.multi_reduction <add>, %184, %cst_73 [1] : vector<16x16xf32> to vector<16xf32>
    %186 = vector.shape_cast %185 : vector<16xf32> to vector<16x1xf32>
    %187 = tpu.reciprocal %186 {approx = true} : vector<16x1xf32> -> vector<16x1xf32>
    %188 = vector.broadcast %187 : vector<16x1xf32> to vector<16x16xf32>
    %189 = arith.mulf %184, %188 : vector<16x16xf32>
    %190 = arith.truncf %189 : vector<16x16xf32> to vector<16x16xbf16>
    %191 = arith.truncf %173 : vector<16x32xf32> to vector<16x32xbf16>
    %cst_74 = arith.constant dense<0.000000e+00> : vector<16x32xf32>
    %192 = tpu.matmul %190, %191, %cst_74 {dimension_numbers = #tpu.dot_dimension_numbers<[1], [0], [0], [1], [0, 0, 1, 1], [], []>} : vector<16x16xbf16>, vector<16x32xbf16>, vector<16x32xf32> -> vector<16x32xf32>
    %193 = arith.truncf %192 : vector<16x32xf32> to vector<16x32xbf16>
    %cst_75 = arith.constant dense<0.000000e+00> : vector<16x32xf32>
    %194 = tpu.matmul %193, %152, %cst_75 {dimension_numbers = #tpu.dot_dimension_numbers<[1], [0], [0], [1], [0, 0, 1, 1], [], []>} : vector<16x32xbf16>, vector<32x32xbf16>, vector<16x32xf32> -> vector<16x32xf32>
    %195 = vector.broadcast %153 : vector<1x32xf32> to vector<16x32xf32>
    %196 = arith.addf %194, %195 : vector<16x32xf32>
    %197 = arith.addf %145, %196 : vector<16x32xf32>
    %cst_76 = arith.constant dense<0.000000e+00> : vector<16xf32>
    %198 = vector.multi_reduction <add>, %197, %cst_76 [1] : vector<16x32xf32> to vector<16xf32>
    %199 = vector.shape_cast %198 : vector<16xf32> to vector<16x1xf32>
    %cst_77 = arith.constant 3.200000e+01 : f32
    %200 = vector.broadcast %cst_77 : f32 to vector<16x1xf32>
    %201 = arith.divf %199, %200 : vector<16x1xf32>
    %202 = vector.broadcast %201 : vector<16x1xf32> to vector<16x32xf32>
    %203 = arith.subf %197, %202 : vector<16x32xf32>
    %204 = arith.mulf %203, %203 : vector<16x32xf32>
    %cst_78 = arith.constant dense<0.000000e+00> : vector<16xf32>
    %205 = vector.multi_reduction <add>, %204, %cst_78 [1] : vector<16x32xf32> to vector<16xf32>
    %206 = vector.shape_cast %205 : vector<16xf32> to vector<16x1xf32>
    %cst_79 = arith.constant 3.200000e+01 : f32
    %207 = vector.broadcast %cst_79 : f32 to vector<16x1xf32>
    %208 = arith.divf %206, %207 : vector<16x1xf32>
    %209 = vector.broadcast %201 : vector<16x1xf32> to vector<16x32xf32>
    %210 = arith.subf %197, %209 : vector<16x32xf32>
    %cst_80 = arith.constant 9.99999974E-6 : f32
    %211 = vector.broadcast %cst_80 : f32 to vector<16x1xf32>
    %212 = arith.addf %208, %211 : vector<16x1xf32>
    %213 = math.rsqrt %212 : vector<16x1xf32>
    %214 = vector.broadcast %213 : vector<16x1xf32> to vector<16x32xf32>
    %215 = arith.mulf %210, %214 : vector<16x32xf32>
    %216 = vector.broadcast %154 : vector<1x32xf32> to vector<16x32xf32>
    %217 = arith.mulf %215, %216 : vector<16x32xf32>
    %218 = vector.broadcast %155 : vector<1x32xf32> to vector<16x32xf32>
    %219 = arith.addf %217, %218 : vector<16x32xf32>
    %220 = arith.truncf %219 : vector<16x32xf32> to vector<16x32xbf16>
    %cst_81 = arith.constant dense<0.000000e+00> : vector<16x64xf32>
    %221 = tpu.matmul %220, %156, %cst_81 {dimension_numbers = #tpu.dot_dimension_numbers<[1], [0], [0], [1], [0, 0, 1, 1], [], []>} : vector<16x32xbf16>, vector<32x64xbf16>, vector<16x64xf32> -> vector<16x64xf32>
    %222 = vector.broadcast %157 : vector<1x64xf32> to vector<16x64xf32>
    %223 = arith.addf %221, %222 : vector<16x64xf32>
    %cst_82 = arith.constant 0.000000e+00 : f32
    %224 = vector.broadcast %cst_82 : f32 to vector<16x64xf32>
    %225 = arith.maximumf %223, %224 : vector<16x64xf32>
    %226 = arith.truncf %225 : vector<16x64xf32> to vector<16x64xbf16>
    %cst_83 = arith.constant dense<0.000000e+00> : vector<16x32xf32>
    %227 = tpu.matmul %226, %158, %cst_83 {dimension_numbers = #tpu.dot_dimension_numbers<[1], [0], [0], [1], [0, 0, 1, 1], [], []>} : vector<16x64xbf16>, vector<64x32xbf16>, vector<16x32xf32> -> vector<16x32xf32>
    %228 = vector.broadcast %159 : vector<1x32xf32> to vector<16x32xf32>
    %229 = arith.addf %227, %228 : vector<16x32xf32>
    %230 = arith.addf %219, %229 : vector<16x32xf32>
    %cst_84 = arith.constant dense<0.000000e+00> : vector<16xf32>
    %231 = vector.multi_reduction <add>, %230, %cst_84 [1] : vector<16x32xf32> to vector<16xf32>
    %232 = vector.shape_cast %231 : vector<16xf32> to vector<16x1xf32>
    %cst_85 = arith.constant 3.200000e+01 : f32
    %233 = vector.broadcast %cst_85 : f32 to vector<16x1xf32>
    %234 = arith.divf %232, %233 : vector<16x1xf32>
    %235 = vector.broadcast %234 : vector<16x1xf32> to vector<16x32xf32>
    %236 = arith.subf %230, %235 : vector<16x32xf32>
    %237 = arith.mulf %236, %236 : vector<16x32xf32>
    %cst_86 = arith.constant dense<0.000000e+00> : vector<16xf32>
    %238 = vector.multi_reduction <add>, %237, %cst_86 [1] : vector<16x32xf32> to vector<16xf32>
    %239 = vector.shape_cast %238 : vector<16xf32> to vector<16x1xf32>
    %cst_87 = arith.constant 3.200000e+01 : f32
    %240 = vector.broadcast %cst_87 : f32 to vector<16x1xf32>
    %241 = arith.divf %239, %240 : vector<16x1xf32>
    %242 = vector.broadcast %234 : vector<16x1xf32> to vector<16x32xf32>
    %243 = arith.subf %230, %242 : vector<16x32xf32>
    %cst_88 = arith.constant 9.99999974E-6 : f32
    %244 = vector.broadcast %cst_88 : f32 to vector<16x1xf32>
    %245 = arith.addf %241, %244 : vector<16x1xf32>
    %246 = math.rsqrt %245 : vector<16x1xf32>
    %247 = vector.broadcast %246 : vector<16x1xf32> to vector<16x32xf32>
    %248 = arith.mulf %243, %247 : vector<16x32xf32>
    %249 = vector.broadcast %160 : vector<1x32xf32> to vector<16x32xf32>
    %250 = arith.mulf %248, %249 : vector<16x32xf32>
    %251 = vector.broadcast %161 : vector<1x32xf32> to vector<16x32xf32>
    %252 = arith.addf %250, %251 : vector<16x32xf32>
    %253 = vector.extract_strided_slice %0 {offsets = [18, 0], sizes = [1, 32], strides = [1, 1]} : vector<20x32xf32> to vector<1x32xf32>
    %254 = vector.extract_strided_slice %0 {offsets = [19, 0], sizes = [1, 32], strides = [1, 1]} : vector<20x32xf32> to vector<1x32xf32>
    %cst_89 = arith.constant dense<0.000000e+00> : vector<16xf32>
    %255 = vector.multi_reduction <add>, %252, %cst_89 [1] : vector<16x32xf32> to vector<16xf32>
    %256 = vector.shape_cast %255 : vector<16xf32> to vector<16x1xf32>
    %cst_90 = arith.constant 3.200000e+01 : f32
    %257 = vector.broadcast %cst_90 : f32 to vector<16x1xf32>
    %258 = arith.divf %256, %257 : vector<16x1xf32>
    %259 = vector.broadcast %258 : vector<16x1xf32> to vector<16x32xf32>
    %260 = arith.subf %252, %259 : vector<16x32xf32>
    %261 = arith.mulf %260, %260 : vector<16x32xf32>
    %cst_91 = arith.constant dense<0.000000e+00> : vector<16xf32>
    %262 = vector.multi_reduction <add>, %261, %cst_91 [1] : vector<16x32xf32> to vector<16xf32>
    %263 = vector.shape_cast %262 : vector<16xf32> to vector<16x1xf32>
    %cst_92 = arith.constant 3.200000e+01 : f32
    %264 = vector.broadcast %cst_92 : f32 to vector<16x1xf32>
    %265 = arith.divf %263, %264 : vector<16x1xf32>
    %266 = vector.broadcast %258 : vector<16x1xf32> to vector<16x32xf32>
    %267 = arith.subf %252, %266 : vector<16x32xf32>
    %cst_93 = arith.constant 9.99999974E-6 : f32
    %268 = vector.broadcast %cst_93 : f32 to vector<16x1xf32>
    %269 = arith.addf %265, %268 : vector<16x1xf32>
    %270 = math.rsqrt %269 : vector<16x1xf32>
    %271 = vector.broadcast %270 : vector<16x1xf32> to vector<16x32xf32>
    %272 = arith.mulf %267, %271 : vector<16x32xf32>
    %273 = vector.broadcast %253 : vector<1x32xf32> to vector<16x32xf32>
    %274 = arith.mulf %272, %273 : vector<16x32xf32>
    %275 = vector.broadcast %254 : vector<1x32xf32> to vector<16x32xf32>
    %276 = arith.addf %274, %275 : vector<16x32xf32>
    %c96_94 = arith.constant 96 : index
    %c0_95 = arith.constant 0 : index
    %277 = vector.load %arg9[%c96_94, %c0_95] : memref<128x64xbf16, #tpu.memory_space<vmem>>, vector<32x64xbf16>
    %278 = arith.truncf %276 : vector<16x32xf32> to vector<16x32xbf16>
    %cst_96 = arith.constant dense<0.000000e+00> : vector<16x64xf32>
    %279 = tpu.matmul %278, %277, %cst_96 {dimension_numbers = #tpu.dot_dimension_numbers<[1], [0], [0], [1], [0, 0, 1, 1], [], []>} : vector<16x32xbf16>, vector<32x64xbf16>, vector<16x64xf32> -> vector<16x64xf32>
    %280 = vector.extract_strided_slice %1 {offsets = [3, 0], sizes = [1, 64], strides = [1, 1]} : vector<4x64xf32> to vector<1x64xf32>
    %281 = vector.broadcast %280 : vector<1x64xf32> to vector<16x64xf32>
    %282 = arith.addf %279, %281 : vector<16x64xf32>
    %c0_97 = arith.constant 0 : index
    %c0_98 = arith.constant 0 : index
    %c0_99 = arith.constant 0 : index
    %283 = vector.load %arg4[%c0_97, %c0_98, %c0_99] : memref<1x16x64xf32, #tpu.memory_space<vmem>>, vector<1x16x64xf32>
    %284 = vector.shape_cast %283 : vector<1x16x64xf32> to vector<16x64xf32>
    %cst_100 = arith.constant dense<0.000000e+00> : vector<16xf32>
    %285 = vector.multi_reduction <add>, %284, %cst_100 [1] : vector<16x64xf32> to vector<16xf32>
    %286 = vector.shape_cast %285 : vector<16xf32> to vector<16x1xf32>
    %cst_101 = arith.constant dense<0xFF800000> : vector<16xf32>
    %287 = vector.multi_reduction <maximumf>, %282, %cst_101 [1] : vector<16x64xf32> to vector<16xf32>
    %288 = vector.shape_cast %287 : vector<16xf32> to vector<16x1xf32>
    %289 = vector.broadcast %288 : vector<16x1xf32> to vector<16x64xf32>
    %290 = arith.subf %282, %289 : vector<16x64xf32>
    %291 = math.exp %290 : vector<16x64xf32>
    %cst_102 = arith.constant dense<0.000000e+00> : vector<16xf32>
    %292 = vector.multi_reduction <add>, %291, %cst_102 [1] : vector<16x64xf32> to vector<16xf32>
    %293 = vector.shape_cast %292 : vector<16xf32> to vector<16x1xf32>
    %294 = math.log %293 : vector<16x1xf32>
    %295 = arith.addf %294, %288 : vector<16x1xf32>
    %296 = arith.mulf %282, %284 : vector<16x64xf32>
    %cst_103 = arith.constant dense<0.000000e+00> : vector<16xf32>
    %297 = vector.multi_reduction <add>, %296, %cst_103 [1] : vector<16x64xf32> to vector<16xf32>
    %298 = vector.shape_cast %297 : vector<16xf32> to vector<16x1xf32>
    %299 = arith.subf %295, %298 : vector<16x1xf32>
    %300 = arith.mulf %299, %286 : vector<16x1xf32>
    %301 = vector.shape_cast %300 : vector<16x1xf32> to vector<1x16x1xf32>
    %cst_104 = arith.constant dense<0.000000e+00> : vector<1xf32>
    %302 = vector.multi_reduction <add>, %301, %cst_104 [1, 2] : vector<1x16x1xf32> to vector<1xf32>
    %303 = vector.shape_cast %302 : vector<1xf32> to vector<1x1x1xf32>
    %304 = vector.extract %303[0, 0, 0] : f32 from vector<1x1x1xf32>
    %cst_105 = arith.constant 1.000000e+00 : f32
    %305 = vector.broadcast %cst_105 : f32 to vector<1x1xf32>
    %306 = vector.broadcast %304 : f32 to vector<1x1xf32>
    %307 = arith.mulf %306, %305 : vector<1x1xf32>
    %c0_106 = arith.constant 0 : index
    %c0_107 = arith.constant 0 : index
    %c0_108 = arith.constant 0 : index
    %308 = vector.load %arg13[%c0_106, %c0_107, %c0_108] : memref<1x1x1xf32, #tpu.memory_space<vmem>>, vector<1x1x1xf32>
    %309 = vector.shape_cast %308 : vector<1x1x1xf32> to vector<1x1xf32>
    %310 = vector.shape_cast %307 : vector<1x1xf32> to vector<1x1x1xf32>
    tpu.vector_store %arg13[%c0_106, %c0_107, %c0_108], %310 {strides = array<i32>} : memref<1x1x1xf32, #tpu.memory_space<vmem>>, vector<1x1x1xf32>,
    %311 = vector.shape_cast %286 : vector<16x1xf32> to vector<1x16x1xf32>
    %cst_109 = arith.constant dense<0.000000e+00> : vector<1xf32>
    %312 = vector.multi_reduction <add>, %311, %cst_109 [1, 2] : vector<1x16x1xf32> to vector<1xf32>
    %313 = vector.shape_cast %312 : vector<1xf32> to vector<1x1x1xf32>
    %314 = vector.extract %313[0, 0, 0] : f32 from vector<1x1x1xf32>
    %cst_110 = arith.constant 1.000000e+00 : f32
    %315 = vector.broadcast %cst_110 : f32 to vector<1x1xf32>
    %316 = vector.broadcast %314 : f32 to vector<1x1xf32>
    %317 = arith.mulf %316, %315 : vector<1x1xf32>
    %c0_111 = arith.constant 0 : index
    %c0_112 = arith.constant 0 : index
    %c0_113 = arith.constant 0 : index
    %318 = vector.load %arg14[%c0_111, %c0_112, %c0_113] : memref<1x1x1xf32, #tpu.memory_space<vmem>>, vector<1x1x1xf32>
    %319 = vector.shape_cast %318 : vector<1x1x1xf32> to vector<1x1xf32>
    %320 = vector.shape_cast %317 : vector<1x1xf32> to vector<1x1x1xf32>
    tpu.vector_store %arg14[%c0_111, %c0_112, %c0_113], %320 {strides = array<i32>} : memref<1x1x1xf32, #tpu.memory_space<vmem>>, vector<1x1x1xf32>,
    return
  }
  func.func @transform_0(%arg0: i32) -> (i32, i32, i32) {
    %c0_i32 = arith.constant 0 : i32
    %c0_i32_0 = arith.constant 0 : i32
    %c0_i32_1 = arith.constant 0 : i32
    return %arg0, %c0_i32, %c0_i32_0 : i32, i32, i32
  }
  func.func @transform_1(%arg0: i32) -> (i32, i32, i32) {
    %c0_i32 = arith.constant 0 : i32
    %c0_i32_0 = arith.constant 0 : i32
    %c0_i32_1 = arith.constant 0 : i32
    return %arg0, %c0_i32, %c0_i32_0 : i32, i32, i32
  }
  func.func @transform_2(%arg0: i32) -> (i32, i32, i32) {
    %c0_i32 = arith.constant 0 : i32
    %c0_i32_0 = arith.constant 0 : i32
    %c0_i32_1 = arith.constant 0 : i32
    return %arg0, %c0_i32, %c0_i32_0 : i32, i32, i32
  }
  func.func @transform_3(%arg0: i32) -> (i32, i32, i32) {
    %c0_i32 = arith.constant 0 : i32
    %c0_i32_0 = arith.constant 0 : i32
    %c0_i32_1 = arith.constant 0 : i32
    return %arg0, %c0_i32, %c0_i32_0 : i32, i32, i32
  }
  func.func @transform_4(%arg0: i32) -> (i32, i32, i32) {
    %c0_i32 = arith.constant 0 : i32
    %c0_i32_0 = arith.constant 0 : i32
    %c0_i32_1 = arith.constant 0 : i32
    return %arg0, %c0_i32, %c0_i32_0 : i32, i32, i32
  }
  func.func @transform_5(%arg0: i32) -> (i32, i32) {
    %c0_i32 = arith.constant 0 : i32
    %c0_i32_0 = arith.constant 0 : i32
    %c0_i32_1 = arith.constant 0 : i32
    return %c0_i32, %c0_i32_0 : i32, i32
  }
  func.func @transform_6(%arg0: i32) -> (i32, i32) {
    %c0_i32 = arith.constant 0 : i32
    %c0_i32_0 = arith.constant 0 : i32
    %c0_i32_1 = arith.constant 0 : i32
    return %c0_i32, %c0_i32_0 : i32, i32
  }
  func.func @transform_7(%arg0: i32) -> (i32, i32) {
    %c0_i32 = arith.constant 0 : i32
    %c0_i32_0 = arith.constant 0 : i32
    %c0_i32_1 = arith.constant 0 : i32
    return %c0_i32, %c0_i32_0 : i32, i32
  }
  func.func @transform_8(%arg0: i32) -> (i32, i32) {
    %c0_i32 = arith.constant 0 : i32
    %c0_i32_0 = arith.constant 0 : i32
    %c0_i32_1 = arith.constant 0 : i32
    return %c0_i32, %c0_i32_0 : i32, i32
  }
  func.func @transform_9(%arg0: i32) -> (i32, i32) {
    %c0_i32 = arith.constant 0 : i32
    %c0_i32_0 = arith.constant 0 : i32
    %c0_i32_1 = arith.constant 0 : i32
    return %c0_i32, %c0_i32_0 : i32, i32
  }
  func.func @transform_10(%arg0: i32) -> (i32, i32) {
    %c0_i32 = arith.constant 0 : i32
    %c0_i32_0 = arith.constant 0 : i32
    %c0_i32_1 = arith.constant 0 : i32
    return %c0_i32, %c0_i32_0 : i32, i32
  }
  func.func @transform_11(%arg0: i32) -> (i32, i32) {
    %c0_i32 = arith.constant 0 : i32
    %c0_i32_0 = arith.constant 0 : i32
    %c0_i32_1 = arith.constant 0 : i32
    return %c0_i32, %c0_i32_0 : i32, i32
  }
  func.func @transform_12(%arg0: i32) -> (i32, i32, i32) {
    %c0_i32 = arith.constant 0 : i32
    %c0_i32_0 = arith.constant 0 : i32
    %c0_i32_1 = arith.constant 0 : i32
    return %arg0, %c0_i32, %c0_i32_0 : i32, i32, i32
  }
  func.func @transform_13(%arg0: i32) -> (i32, i32, i32) {
    %c0_i32 = arith.constant 0 : i32
    %c0_i32_0 = arith.constant 0 : i32
    %c0_i32_1 = arith.constant 0 : i32
    return %arg0, %c0_i32, %c0_i32_0 : i32, i32, i32
  }
}

</mosaic_0001>

<bundles_post_ra>
// kernel: med_image_report_model_forward.1
= control target key start
LH: loop header
LB: loop body
LE: loop exit
PB: predicated region body
PF: predicated region fallthrough
CT: control target
= control target key end

     0   :  { %s3279_s25 = smov 0   ;;  %s3808_s0 = inlined_call_operand.vmem [shape: bf16[2,256,32], index: 0, kind: input, shape index: {}]   ;;  %s3809_s1 = inlined_call_operand.vmem [shape: f32[2,1,8], index: 1, kind: input, shape index: {}]   ;;  %s3810_s2 = inlined_call_operand.vmem [shape: bf16[2,16,64], index: 2, kind: input, shape index: {}]   ;;  %s3811_s3 = inlined_call_operand.vmem [shape: f32[2,16,64], index: 3, kind: input, shape index: {}]   ;;  %s3812_s4 = inlined_call_operand.vmem [shape: f32[2,16,16], index: 4, kind: input, shape index: {}]   ;;  %s3813_s5 = inlined_call_operand.vmem [shape: bf16[8,256], index: 5, kind: input, shape index: {}]   ;;  %s3814_s6 = inlined_call_operand.vmem [shape: f32[8,32], index: 6, kind: input, shape index: {}]   ;;  %s3815_s7 = inlined_call_operand.vmem [shape: f32[16,32], index: 7, kind: input, shape index: {}]   ;;  %s3816_s8 = inlined_call_operand.vmem [shape: bf16[128,64], index: 8, kind: input, shape index: {}]   ;;  %s3817_s9 = inlined_call_operand.vmem [shape: bf16[544,32], index: 9, kind: input, shape index: {}]   ;;  %s3818_s10 = inlined_call_operand.vmem [shape: f32[20,32], index: 10, kind: input, shape index: {}]   ;;  %s3819_s11 = inlined_call_operand.vmem [shape: f32[4,64], index: 11, kind: input, shape index: {}]   ;;  %s3820_s12 = inlined_call_operand.vmem [shape: f32[2,1,1], index: 12, kind: output, shape index: {0}]   ;;  %s3821_s13 = inlined_call_operand.vmem [shape: f32[2,1,1], index: 13, kind: output, shape index: {1}]  }
   0x1 LB: > { %s2661_s26 = sadd.s32 4294967295, %s3205_s25   ;;  %p2665_p0 = scmp.ge.s32.totalorder %s3205_s25, 1  ;;  %s3205_s25 = sphi %s3279_s25, %s24_s25  }
   0x2   : > { %p428_p1 = scmp.lt.s32.totalorder %s3205_s25, 3 }
   0x4   : > { %p429_p2 = pnand %p2665_p0, %p428_p1 }
   0x5   : > { %v3101_v0 = vld [vmem:[%s3816_s8] sm:$0xff] (!%p429_p2)   ;;  %p491_p3 = scmp.lt.s32.totalorder (!%p429_p2), %s2661_s26, 1  ;;  %v3102_v1 = vld [vmem:[%s3816_s8 + $0x8] sm:$0xff] (!%p429_p2)   ;;  %vm657_vm0 = vcmask (!%p429_p2), 261120   ;;  %v3207_v20 = vmov (!%p429_p2), 0.0   ;;  %v561_v21 = vlaneseq (!%p429_p2)  ;;  %vm3208_vm1 = vmmov (!%p429_p2), 0  }
   0x6   : > { %432 = sbr.rel (%p429_p2) target bundleno = 6559 (0x199f), region = 68  ;;  %2883 = vmatprep.subr.bf16.mxu0 (!%p429_p2), %v3101_v0  ;;  %v3336_v18 = vld [vmem:[%s3813_s5] sm:$0xff] (!%p429_p2)  ;;  %vm997_vm2 = vcmask (!%p429_p2), 523264   ;;  %vm1315_vm3 = vcmask (!%p429_p2), 1043456   ;;  %vm1298_vm4 = vcmask (!%p429_p2), 64512   ;;  %vm2021_vm6 = vcmask (!%p429_p2), 130048  }
   0x7   : > { %2884 = vmatpush3.bf16.msra.mxu0 (!%p429_p2), %v3101_v0  ;;  %v2709_v19 = vcombine.high (!%p429_p2), %v3336_v18, %v3336_v18  ;;  %v3341_v22 = vshrl.u32 (!%p429_p2), %v561_v21, 7  ;;  %v3349_v24 = vld [vmem:[%s3819_s11] sm:$0xf] (!%p429_p2)  ;;  %vm2514_vm7 = vcmask (!%p429_p2), 7168   ;;  %vm2528_vm8 = vcmask (!%p429_p2), 0  }
   0x8   : > { %2885 = vmatprep.subr.bf16.mxu0 (!%p429_p2), %v3102_v1 }
   0x9   : > { %955 = vmatprep.mubr.bf16.mxu1 (!%p429_p2), %v2709_v19  ;;  %v3344_v23 = vsub.s32 (!%p429_p2), 0, %v3341_v22  ;;  %vm1674_vm5 = vcmp.eq.s32.totalorder (!%p429_p2), %v3341_v22, 0 }
   0xb   : > { %2886 = vmatpush3.bf16.msra.mxu0 (!%p429_p2), %v3102_v1  ;;  %v3353_v25 = vrot.slane (!%p429_p2), %v3349_v24, %v3344_v23 }
   0xc   : > { %2947 = vmatprep.subr.bf16.mxu0 (!%p429_p2), %v3207_v20 }
   0xd   : > { %s3823_s26 = smov (!%p491_p3, %s2661_s26), 1 }
   0xe   : > { %s2775_s14 = sshll.u32 %s3823_s26, 7  ;;  %s498_s18 = scalar_lea.vmem %s3809_s1, %s3823_s26 }
   0xf   : > { %s3299_s17 = scalar_lea.vmem %s3808_s0, %s2775_s14  ;;  %s2776_s24 = sshll.u32 %s3823_s26, 3 }
  0x10   : > { %v3103_v2 = vld [vmem:[%s3299_s17] sm:$0xff]   ;;  %v3104_v3 = vld [vmem:[%s3299_s17 + $0x8] sm:$0xff]   ;;  %v3105_v4 = vld [vmem:[%s3299_s17 + $0x10] sm:$0xff]   ;;  %s503_s29 = scalar_lea.vmem %s3810_s2, %s2776_s24  ;;  %s2777_s24 = sshll.u32 %s3823_s26, 4 }
  0x11   : > { %2887 = vmatprep.mubr.msk.bf16.mxu0 %vm657_vm0, %v3103_v2  ;;  %v3106_v5 = vld [vmem:[%s3299_s17 + $0x18] sm:$0xff]   ;;  %v3107_v6 = vld [vmem:[%s3299_s17 + $0x20] sm:$0xff]   ;;  %v3108_v7 = vld [vmem:[%s3299_s17 + $0x28] sm:$0xff]   ;;  %s508_s28 = scalar_lea.vmem %s3811_s3, %s2777_s24  ;;  %s516_s30 = scalar_lea.vmem %s3820_s12, %s3823_s26 }
  0x12   : > { %2888 = vmatmul.mubr.msk.bf16.vlgmr.msra.gmra.mrb[0].mxu0 %vm657_vm0, %v3104_v3  ;;  %v3109_v8 = vld [vmem:[%s3299_s17 + $0x30] sm:$0xff]   ;;  %v3110_v9 = vld [vmem:[%s3299_s17 + $0x38] sm:$0xff]   ;;  %v3111_v10 = vld [vmem:[%s3299_s17 + $0x40] sm:$0xff]  }
  0x13   : > { %2891 = vmatprep.mubr.msk.bf16.mxu0 %vm657_vm0, %v3105_v4  ;;  %v3112_v11 = vld [vmem:[%s3299_s17 + $0x48] sm:$0xff]   ;;  %v3113_v12 = vld [vmem:[%s3299_s17 + $0x50] sm:$0xff]   ;;  %v3114_v13 = vld [vmem:[%s3299_s17 + $0x58] sm:$0xff]  }
  0x14   : > { %v3115_v14 = vld [vmem:[%s3299_s17 + $0x60] sm:$0xff]   ;;  %v3116_v15 = vld [vmem:[%s3299_s17 + $0x68] sm:$0xff]   ;;  %v3117_v16 = vld [vmem:[%s3299_s17 + $0x70] sm:$0xff]  }
  0x15   : > { %v3118_v17 = vld [vmem:[%s3299_s17 + $0x78] sm:$0xff]   ;;  %s519_s17 = scalar_lea.vmem %s3821_s13, %s3823_s26 }
  0x1a   : > { %2892 = vmatmul.mubr.msk.bf16.gmra.mrb[4].mxu0 %vm657_vm0, %v3106_v5 }
  0x1b   : > { %2895 = vmatprep.mubr.msk.bf16.mxu0 %vm657_vm0, %v3107_v6 }
  0x22   : > { %2896 = vmatmul.mubr.msk.bf16.gmra.mrb[8].mxu0 %vm657_vm0, %v3108_v7 }
  0x23   : > { %2899 = vmatprep.mubr.msk.bf16.mxu0 %vm657_vm0, %v3109_v8 }
  0x2a   : > { %2900 = vmatmul.mubr.msk.bf16.gmra.mrb[12].mxu0 %vm657_vm0, %v3110_v9 }
  0x2b   : > { %2903 = vmatprep.mubr.msk.bf16.mxu0 %vm657_vm0, %v3111_v10 }
  0x32   : > { %2904 = vmatmul.mubr.msk.bf16.gmra.mrb[16].mxu0 %vm657_vm0, %v3112_v11 }
  0x33   : > { %2907 = vmatprep.mubr.msk.bf16.mxu0 %vm657_vm0, %v3113_v12 }
  0x3a   : > { %2908 = vmatmul.mubr.msk.bf16.gmra.mrb[20].mxu0 %vm657_vm0, %v3114_v13 }
  0x3b   : > { %2911 = vmatprep.mubr.msk.bf16.mxu0 %vm657_vm0, %v3115_v14 }
  0x42   : > { %2912 = vmatmul.mubr.msk.bf16.gmra.mrb[24].mxu0 %vm657_vm0, %v3116_v15 }
  0x43   : > { %2915 = vmatprep.mubr.msk.bf16.mxu0 %vm657_vm0, %v3117_v16 }
  0x4a   : > { %2916 = vmatmul.mubr.msk.bf16.gmra.mrb[28].mxu0 %vm657_vm0, %v3118_v17 }
  0x4b   : > { %2951 = vmatprep.mubr.msk.bf16.mxu0 %vm3208_vm1, %v3207_v20 }
  0xe5   : > { %v2889_v26 = vpop.f32.mrb[0].mxu0 }
  0xe6   : > { %v749_v27 = vadd.f32 %v2889_v26, %v3353_v25  ;;  %v740_v28 = vpop.f32.mrb[1].mxu0 }
  0xe7   : > { %v741_v29 = vadd.f32 %v740_v28, %v3353_v25  ;;  %v2890_v30 = vpop.f32.mrb[2].mxu0 }
  0xe8   : > { %v752_v31 = vadd.f32 %v2890_v30, %v3353_v25  ;;  %v743_v32 = vpop.f32.mrb[3].mxu0  ;;  %v869_v34 = vmax.f32 %v749_v27, 0.0 }
  0xe9   : > { %v744_v33 = vadd.f32 %v743_v32, %v3353_v25  ;;  %v867_v36 = vmax.f32 %v741_v29, 0.0 }
  0xea   : > { %v870_v35 = vmax.f32 %v752_v31, 0.0 }
  0xeb   : > { %v868_v37 = vmax.f32 %v744_v33, 0.0 }
  0xec   : > { %v3359_v38 = vpack.c.bf16 %v870_v35, %v869_v34 }
  0xed   : > { %v2893_v39 = vpop.f32.mrb[4].mxu0  ;;  %v3361_v40 = vpack.c.bf16 %v868_v37, %v867_v36 }
  0xee   : > { %v765_v41 = vadd.f32 %v2893_v39, %v3353_v25  ;;  %v756_v42 = vpop.f32.mrb[5].mxu0 }
  0xef   : > { %v757_v43 = vadd.f32 %v756_v42, %v3353_v25  ;;  %v2894_v44 = vpop.f32.mrb[6].mxu0 }
  0xf0   : > { %v768_v45 = vadd.f32 %v2894_v44, %v3353_v25  ;;  %v759_v46 = vpop.f32.mrb[7].mxu0  ;;  %v873_v48 = vmax.f32 %v765_v41, 0.0 }
  0xf1   : > { %v760_v47 = vadd.f32 %v759_v46, %v3353_v25  ;;  %v871_v50 = vmax.f32 %v757_v43, 0.0 }
  0xf2   : > { %v874_v49 = vmax.f32 %v768_v45, 0.0 }
  0xf3   : > { %v872_v51 = vmax.f32 %v760_v47, 0.0 }
  0xf4   : > { %v3367_v52 = vpack.c.bf16 %v874_v49, %v873_v48 }
  0xf5   : > { %v3369_v53 = vpack.c.bf16 %v872_v51, %v871_v50  ;;  %v2897_v54 = vpop.f32.mrb[8].mxu0 }
  0xf6   : > { %v781_v55 = vadd.f32 %v2897_v54, %v3353_v25  ;;  %v772_v56 = vpop.f32.mrb[9].mxu0 }
  0xf7   : > { %v773_v57 = vadd.f32 %v772_v56, %v3353_v25  ;;  %v2898_v58 = vpop.f32.mrb[10].mxu0 }
  0xf8   : > { %v784_v59 = vadd.f32 %v2898_v58, %v3353_v25  ;;  %v775_v60 = vpop.f32.mrb[11].mxu0  ;;  %v877_v62 = vmax.f32 %v781_v55, 0.0 }
  0xf9   : > { %v776_v61 = vadd.f32 %v775_v60, %v3353_v25  ;;  %v875_v0 = vmax.f32 %v773_v57, 0.0 }
  0xfa   : > { %v878_v63 = vmax.f32 %v784_v59, 0.0 }
  0xfb   : > { %v876_v1 = vmax.f32 %v776_v61, 0.0 }
  0xfc   : > { %v3375_v2 = vpack.c.bf16 %v878_v63, %v877_v62 }
  0xfd   : > { %v3377_v3 = vpack.c.bf16 %v876_v1, %v875_v0  ;;  %v2901_v4 = vpop.f32.mrb[12].mxu0 }
  0xfe   : > { %v797_v5 = vadd.f32 %v2901_v4, %v3353_v25  ;;  %v788_v6 = vpop.f32.mrb[13].mxu0 }
  0xff   : > { %v789_v7 = vadd.f32 %v788_v6, %v3353_v25  ;;  %v2902_v8 = vpop.f32.mrb[14].mxu0 }
 0x100   : > { %v800_v9 = vadd.f32 %v2902_v8, %v3353_v25  ;;  %v791_v10 = vpop.f32.mrb[15].mxu0  ;;  %v881_v12 = vmax.f32 %v797_v5, 0.0 }
 0x101   : > { %v792_v11 = vadd.f32 %v791_v10, %v3353_v25  ;;  %v879_v14 = vmax.f32 %v789_v7, 0.0 }
 0x102   : > { %v882_v13 = vmax.f32 %v800_v9, 0.0 }
 0x103   : > { %v880_v15 = vmax.f32 %v792_v11, 0.0 }
 0x104   : > { %v3383_v16 = vpack.c.bf16 %v882_v13, %v881_v12 }
 0x105   : > { %v3385_v17 = vpack.c.bf16 %v880_v15, %v879_v14  ;;  %v2905_v19 = vpop.f32.mrb[16].mxu0 }
 0x106   : > { %v813_v21 = vadd.f32 %v2905_v19, %v3353_v25  ;;  %v804_v26 = vpop.f32.mrb[17].mxu0 }
 0x107   : > { %v805_v27 = vadd.f32 %v804_v26, %v3353_v25  ;;  %v2906_v28 = vpop.f32.mrb[18].mxu0  ;;  %v2708_v26 = vcombine.low %v3336_v18, %v3336_v18  ;;  %v3123_v18 = vld [vmem:[%s3817_s9 + $0x10] sm:$0xff]  }
 0x108   : > { %v816_v29 = vadd.f32 %v2906_v28, %v3353_v25  ;;  %v807_v30 = vpop.f32.mrb[19].mxu0  ;;  %v885_v32 = vmax.f32 %v813_v21, 0.0 }
 0x109   : > { %v808_v31 = vadd.f32 %v807_v30, %v3353_v25  ;;  %v883_v34 = vmax.f32 %v805_v27, 0.0 }
 0x10a   : > { %v886_v33 = vmax.f32 %v816_v29, 0.0 }
 0x10b   : > { %v884_v35 = vmax.f32 %v808_v31, 0.0  ;;  %v3125_v31 = vld [vmem:[%s3817_s9 + $0x20] sm:$0xff]  }
 0x10c   : > { %v909_v36 = vpack.c.bf16 %v886_v33, %v885_v32  ;;  %v3127_v33 = vld [vmem:[%s3817_s9 + $0x28] sm:$0xff]  }
 0x10d   : > { %v2909_v37 = vpop.f32.mrb[20].mxu0  ;;  %v908_v39 = vpack.c.bf16 %v884_v35, %v883_v34  ;;  %v3128_v34 = vld [vmem:[%s3817_s9 + $0x48] sm:$0xff]   ;;  %v972_v35 = vld [vmem:[%s3814_s6] sm:$0xff] }
 0x10e   : > { %v829_v41 = vadd.f32 %v2909_v37, %v3353_v25  ;;  %v820_v42 = vpop.f32.mrb[21].mxu0 }
 0x10f   : > { %v821_v43 = vadd.f32 %v820_v42, %v3353_v25  ;;  %v2910_v44 = vpop.f32.mrb[22].mxu0  ;;  %2797 = vmatprep.subr.bf16.mxu1 %v908_v39  ;;  %v3129_v42 = vld [vmem:[%s3817_s9 + $0x30] sm:$0xff]  }
 0x110   : > { %v832_v45 = vadd.f32 %v2910_v44, %v3353_v25  ;;  %v823_v46 = vpop.f32.mrb[23].mxu0  ;;  %2798 = vmatpush3.bf16.msra.mxu1 %v3361_v40  ;;  %v889_v48 = vmax.f32 %v829_v41, 0.0 }
 0x111   : > { %v824_v47 = vadd.f32 %v823_v46, %v3353_v25  ;;  %2799 = vmatprep.subr.bf16.mxu1 %v909_v36  ;;  %v887_v50 = vmax.f32 %v821_v43, 0.0  ;;  %v3478_v46 = vsub.s32 2, %v3341_v22 }
 0x112   : > { %v890_v49 = vmax.f32 %v832_v45, 0.0  ;;  %v3130_v45 = vld [vmem:[%s3817_s9 + $0x38] sm:$0xff]  }
 0x113   : > { %v888_v51 = vmax.f32 %v824_v47, 0.0  ;;  %v3483_v47 = vld [vmem:[%s3818_s10] sm:$0xff] }
 0x114   : > { %v911_v54 = vpack.c.bf16 %v890_v49, %v889_v48  ;;  %2800 = vmatpush3.bf16.msra.mxu1 %v3359_v38  ;;  %v1189_v48 = vrot.slane %v3483_v47, %v3478_v46 }
 0x115   : > { %v910_v55 = vpack.c.bf16 %v888_v51, %v887_v50  ;;  %v2913_v56 = vpop.f32.mrb[24].mxu0 }
 0x116   : > { %v845_v57 = vadd.f32 %v2913_v56, %v3353_v25  ;;  %v836_v58 = vpop.f32.mrb[25].mxu0  ;;  %v3488_v56 = vsub.s32 1, %v3341_v22 }
 0x117   : > { %v837_v59 = vadd.f32 %v836_v58, %v3353_v25  ;;  %v2914_v60 = vpop.f32.mrb[26].mxu0  ;;  %2801 = vmatprep.subr.bf16.mxu1 %v910_v55 }
 0x118   : > { %v848_v40 = vadd.f32 %v2914_v60, %v3353_v25  ;;  %v839_v61 = vpop.f32.mrb[27].mxu0  ;;  %2802 = vmatpush3.bf16.msra.mxu1 %v3369_v53  ;;  %v893_v63 = vmax.f32 %v845_v57, 0.0 }
 0x119   : > { %v840_v62 = vadd.f32 %v839_v61, %v3353_v25  ;;  %2803 = vmatprep.subr.bf16.mxu1 %v911_v54  ;;  %v891_v38 = vmax.f32 %v837_v59, 0.0 }
 0x11a   : > { %v894_v0 = vmax.f32 %v848_v40, 0.0 }
 0x11b   : > { %v892_v1 = vmax.f32 %v840_v62, 0.0  ;;  %v1133_v62 = vrot.slane %v3483_v47, %v3488_v56 }
 0x11c   : > { %v913_v4 = vpack.c.bf16 %v894_v0, %v893_v63  ;;  %2804 = vmatpush3.bf16.msra.mxu1 %v3367_v52 }
 0x11d   : > { %v912_v5 = vpack.c.bf16 %v892_v1, %v891_v38  ;;  %v2917_v6 = vpop.f32.mrb[28].mxu0 }
 0x11e   : > { %v861_v7 = vadd.f32 %v2917_v6, %v3353_v25  ;;  %v852_v8 = vpop.f32.mrb[29].mxu0 }
 0x11f   : > { %v853_v9 = vadd.f32 %v852_v8, %v3353_v25  ;;  %v2918_v10 = vpop.f32.mrb[30].mxu0  ;;  %2805 = vmatprep.subr.bf16.mxu1 %v912_v5 }
 0x120   : > { %v864_v53 = vadd.f32 %v2918_v10, %v3353_v25  ;;  %v855_v11 = vpop.f32.mrb[31].mxu0  ;;  %2806 = vmatpush3.bf16.msra.mxu1 %v3377_v3  ;;  %v897_v13 = vmax.f32 %v861_v7, 0.0  ;;  %v3124_v3 = vld [vmem:[%s3817_s9 + $0x18] sm:$0xff]  }
 0x121   : > { %v856_v12 = vadd.f32 %v855_v11, %v3353_v25  ;;  %2807 = vmatprep.subr.bf16.mxu1 %v913_v4  ;;  %v895_v52 = vmax.f32 %v853_v9, 0.0  ;;  %v3121_v25 = vld [vmem:[%s3817_s9] sm:$0xff]   ;;  %v1074_v4 = vrot.slane %v3483_v47, %v3344_v23 }
 0x122   : > { %v898_v14 = vmax.f32 %v864_v53, 0.0  ;;  %v2725_v53 = vld [vmem:[%s498_s18] ss:$0 sm:$0xff] }
 0x123   : > { %v896_v15 = vmax.f32 %v856_v12, 0.0 }
 0x124   : > { %v915_v19 = vpack.c.bf16 %v898_v14, %v897_v13  ;;  %2808 = vmatpush3.bf16.msra.mxu1 %v3375_v2  ;;  %v3122_v2 = vld [vmem:[%s3817_s9 + $0x8] sm:$0xff]  }
 0x125   : > { %v914_v21 = vpack.c.bf16 %v896_v15, %v895_v52 }
 0x127   : > { %2809 = vmatprep.subr.bf16.mxu1 %v914_v21 }
 0x128   : > { %2810 = vmatpush3.bf16.msra.mxu1 %v3385_v17 }
 0x129   : > { %2811 = vmatprep.subr.bf16.mxu1 %v915_v19 }
 0x12c   : > { %2812 = vmatpush3.bf16.msra.mxu1 %v3383_v16  ;;  %v3126_v16 = vld [vmem:[%s3817_s9 + $0x40] sm:$0xff]  }
 0x12d   : > { %2919 = vmatprep.subr.bf16.mxu1 %v3207_v20  ;;  %2948 = vmatpush3.bf16.msra.mxu0 %v3126_v16 }
 0x12e   : > { %2949 = vmatprep.subr.bf16.mxu0 %v3207_v20 }
 0x12f   : > { %956 = vmatmul.mubr.bf16.vlgmr.msra.gmra.mrb[0].mxu1 %v2708_v26 }
 0x130   : > { %2920 = vmatpush3.bf16.msra.mxu1 %v3121_v25  ;;  %2927 = vmatprep.mubr.msk.bf16.mxu1 %vm3208_vm1, %v3207_v20 }
 0x131   : > { %2921 = vmatprep.subr.bf16.mxu1 %v3207_v20  ;;  %2950 = vmatpush3.bf16.msra.mxu0 %v3128_v34  ;;  %v3521_v34 = vsub.s32 3, %v3341_v22 }
 0x132   : > { %2961 = vmatprep.subr.bf16.mxu0 %v3207_v20 }
 0x134   : > { %2922 = vmatpush3.bf16.msra.mxu1 %v3122_v2 }
 0x135   : > { %2923 = vmatprep.subr.bf16.mxu1 %v3207_v20 }
 0x138   : > { %2924 = vmatpush3.bf16.msra.mxu1 %v3123_v18  ;;  %v3131_v18 = vld [vmem:[%s3817_s9 + $0x50] sm:$0xff]  }
 0x139   : > { %2925 = vmatprep.subr.bf16.mxu1 %v3207_v20 }
 0x13c   : > { %2926 = vmatpush3.bf16.msra.mxu1 %v3124_v3 }
 0x13d   : > { %2931 = vmatprep.subr.bf16.mxu1 %v3207_v20 }
 0x202   : > { %v2813_v17 = vpop.f32.mrb[0].mxu1 }
 0x203   : > { %v2814_v27 = vpop.f32.mrb[1].mxu1 }
 0x204   : > { %v2815_v28 = vadd.f32 %v2814_v27, %v2813_v17  ;;  %v2816_v29 = vpop.f32.mrb[2].mxu1 }
 0x205   : > { %v2817_v30 = vpop.f32.mrb[3].mxu1 }
 0x206   : > { %v971_v32 = vpack.c.bf16 %v2815_v28, %v2815_v28  ;;  %v3132_v28 = vld [vmem:[%s3817_s9 + $0x58] sm:$0xff]  }
 0x208   : > { %2928 = vmatmul.mubr.msk.bf16.vlgmr.msra.gmra.mrb[4].mxu1 %vm997_vm2, %v971_v32 }
 0x209   : > { %2932 = vmatpush3.bf16.msra.mxu1 %v3125_v31  ;;  %2935 = vmatprep.mubr.msk.bf16.mxu1 %vm3208_vm1, %v3207_v20 }
 0x20a   : > { %2933 = vmatprep.subr.bf16.mxu1 %v3207_v20 }
 0x20d   : > { %2934 = vmatpush3.bf16.msra.mxu1 %v3127_v33 }
 0x20e   : > { %2939 = vmatprep.subr.bf16.mxu1 %v3207_v20 }
 0x2db   : > { %v1035_v36 = vpop.f32.mrb[4].mxu1 }
 0x2dc   : > { %v3456_v37 = vadd.f32 %v1035_v36, %v972_v35  ;;  %v2929_v39 = vpop.f32.mrb[5].mxu1  ;;  %v1363_v35 = vrot.slane %v3483_v47, %v3521_v34 }
 0x2dd   : > { %v1038_v41 = vpop.f32.mrb[6].mxu1 }
 0x2de   : > { %v1070_v43 = vpack.c.bf16 %v3456_v37, %v3456_v37  ;;  %v2930_v44 = vpop.f32.mrb[7].mxu1 }
 0x2e0   : > { %2936 = vmatmul.mubr.msk.bf16.vlgmr.msra.gmra.mrb[8].mxu1 %vm657_vm0, %v1070_v43  ;;  %2952 = vmatmul.mubr.msk.bf16.vlgmr.msra.gmra.mrb[32].mxu0 %vm657_vm0, %v1070_v43 }
 0x2e1   : > { %2940 = vmatpush3.bf16.msra.mxu1 %v3129_v42  ;;  %2943 = vmatprep.mubr.msk.bf16.mxu1 %vm3208_vm1, %v3207_v20 }
 0x2e2   : > { %2941 = vmatprep.subr.bf16.mxu1 %v3207_v20  ;;  %2963 = vmatprep.mubr.msk.bf16.mxu0 %vm3208_vm1, %v3207_v20 }
 0x2e5   : > { %2942 = vmatpush3.bf16.msra.mxu1 %v3130_v45 }
 0x2e6   : > { %2955 = vmatprep.subr.bf16.mxu1 %v3207_v20 }
 0x2e8   : > { %2944 = vmatmul.mubr.msk.bf16.vlgmr.msra.gmra.mrb[12].mxu1 %vm657_vm0, %v1070_v43 }
 0x2e9   : > { %2957 = vmatprep.mubr.msk.bf16.mxu1 %vm3208_vm1, %v3207_v20 }
 0x3b3   : > { %v1124_v49 = vpop.f32.mrb[8].mxu1  ;;  %v1236_v50 = vpop.f32.mrb[32].mxu0 }
 0x3b4   : > { %v1237_v51 = vadd.f32 %v1236_v50, %v1189_v48  ;;  %v2937_v54 = vpop.f32.mrb[9].mxu1  ;;  %v2953_v55 = vpop.f32.mrb[33].mxu0  ;;  %v1125_v8 = vadd.f32 %v1124_v49, %v1074_v4 }
 0x3b5   : > { %v1127_v57 = vpop.f32.mrb[10].mxu1  ;;  %v1239_v58 = vpop.f32.mrb[34].mxu0  ;;  %v3133_v55 = vld [vmem:[%s3816_s8 + $0x10] sm:$0xff]  }
 0x3b6   : > { %v1311_v59 = vpack.c.bf16 %v1237_v51, %v1237_v51  ;;  %v2938_v60 = vpop.f32.mrb[11].mxu1  ;;  %v2954_v40 = vpop.f32.mrb[35].mxu0  ;;  %v1242_v9 = vpack.c.bf16 %v1125_v8, %v1125_v8  ;;  %v3135_v57 = vld [vmem:[%s3817_s9 + $0x60] sm:$0xff]   ;;  %v3136_v58 = vld [vmem:[%s3817_s9 + $0x68] sm:$0xff]   ;;  %v3138_v8 = vld [vmem:[%s3817_s9 + $0x78] sm:$0xff]  }
 0x3b8   : > { %v1317_v61 = vsel %vm1315_vm3, %v1311_v59, 0 }
 0x3b9   : > { %2962 = vmatpush3.bf16.msra.mxu0 %v1317_v61  ;;  %v1436_v61 = vsub.s32 4, %v3341_v22 }
 0x3ba   : > { %2975 = vmatprep.subr.bf16.mxu0 %v3207_v20 }
 0x3bb   : > { %v1180_v63 = vpop.f32.mrb[12].mxu1 }
 0x3bc   : > { %v1181_v0 = vadd.f32 %v1180_v63, %v1133_v62  ;;  %v2945_v38 = vpop.f32.mrb[13].mxu1  ;;  %v1441_v62 = vsub.s32 5, %v3341_v22  ;;  %v1437_v63 = vrot.slane %v3483_v47, %v1436_v61 }
 0x3bd   : > { %v1183_v1 = vpop.f32.mrb[14].mxu1 }
 0x3be   : > { %v1243_v5 = vpack.c.bf16 %v1181_v0, %v1181_v0  ;;  %v2946_v6 = vpop.f32.mrb[15].mxu1  ;;  %v1442_v1 = vrot.slane %v3483_v47, %v1441_v62 }
 0x3c0   : > { %v1248_v7 = vsel %vm657_vm0, %v1243_v5, 0 }
 0x3c1   : > { %2956 = vmatpush3.bf16.xpose.msra.mxu1 %v1248_v7  ;;  %v3137_v7 = vld [vmem:[%s3817_s9 + $0x70] sm:$0xff]  }
 0x3c2   : > { %2967 = vmatprep.subr.bf16.mxu1 %v3207_v20 }
 0x3c8   : > { %2958 = vmatmul.mubr.msk.bf16.vlgmr.msra.gmra.mrb[16].mxu1 %vm657_vm0, %v1242_v9  ;;  %v1448_v9 = vrot.slane %v3349_v24, %v3488_v56 }
 0x3c9   : > { %2971 = vmatprep.mubr.msk.bf16.mxu1 %vm3208_vm1, %v3207_v20  ;;  %2968 = vmatpush3.bf16.msra.mxu1 %v3131_v18 }
 0x3ca   : > { %2969 = vmatprep.subr.bf16.mxu1 %v3207_v20 }
 0x3cd   : > { %2970 = vmatpush3.bf16.msra.mxu1 %v3132_v28 }
 0x3ce   : > { %2983 = vmatprep.subr.bf16.mxu1 %v3207_v20 }
 0x49b   : > { %v1284_v10 = vpop.f32.mrb[16].mxu1 }
 0x49c   : > { %v1290_v11 = vmul.f32 0.17677669, %v1284_v10  ;;  %v2959_v12 = vpop.f32.mrb[17].mxu1 }
 0x49d   : > { %v1287_v13 = vpop.f32.mrb[18].mxu1 }
 0x49e   : > { %v2960_v14 = vpop.f32.mrb[19].mxu1  ;;  %v1297_v52 = vadd.f32 %v2725_v53, %v1290_v11 }
 0x4a0   : > { %v1299_v15 = vsel %vm1298_vm4, %v1297_v52, -inf }
 0x4a1   : > { %1300 = vmax.xlane.f32.xlu0 %v1299_v15  ;;  %v1508_v15 = vsub.s32 6, %v3341_v22 }
 0x52e   : > { %v1301_v19 = vpop.xlane.xlu0 %1300 }
 0x52f   : > { %v1302_v21 = vsub.f32 %v1297_v52, %v1301_v19  ;;  %v1509_v19 = vrot.slane %v3483_v47, %v1508_v15 }
 0x531   : > { %v1303_v26 = vmul.f32 1.442695, %v1302_v21 }
 0x533   : > { %3162 = vpow2.f32 %v1303_v26 }
 0x53d   : > { %v3163_v25 = vpop.eup %3162 }
 0x53e   : > { %v1305_v2 = vsel %vm1298_vm4, %v3163_v25, 0.0 }
 0x53f   : > { %1306 = vadd.xlane.f32.xlu0 %v1305_v2 }
 0x5cc   : > { %v1307_v3 = vpop.xlane.xlu0 %1306 }
 0x5cd   : > { %3164 = vrcp.f32 %v1307_v3 }
 0x5d7   : > { %v3165_v16 = vpop.eup %3164 }
 0x5d8   : > { %v1309_v17 = vmul.f32 %v3165_v16, %v3163_v25 }
 0x5da   : > { %v1310_v27 = vpack.c.bf16 %v1309_v17, %v1309_v17 }
 0x5dc   : > { %2964 = vmatmul.mubr.msk.bf16.vlgmr.msra.gmra.mrb[36].mxu0 %vm1298_vm4, %v1310_v27 }
 0x5dd   : > { %2979 = vmatprep.mubr.msk.bf16.mxu0 %vm3208_vm1, %v3207_v20  ;;  %2976 = vmatpush3.bf16.msra.mxu0 %v3133_v55  ;;  %v3145_v55 = vld [vmem:[%s503_s29] sm:$0xff]   ;;  %s513_s29 = scalar_lea.vmem %s3812_s4, %s2777_s24 }
 0x5de   : > { %2977 = vmatprep.subr.bf16.mxu0 %v3207_v20 }
 0x6af   : > { %v1353_v29 = vpop.f32.mrb[36].mxu0 }
 0x6b0   : > { %v1359_v30 = vpack.c.bf16 %v1353_v29, %v1353_v29  ;;  %v2965_v31 = vpop.f32.mrb[37].mxu0 }
 0x6b1   : > { %v1356_v32 = vpop.f32.mrb[38].mxu0  ;;  %v3140_v31 = vld [vmem:[%s3817_s9 + $0x88] sm:$0xff]  }
 0x6b2   : > { %v2966_v33 = vpop.f32.mrb[39].mxu0  ;;  %2972 = vmatmul.mubr.msk.bf16.vlgmr.msra.gmra.mrb[20].mxu1 %vm657_vm0, %v1359_v30  ;;  %v3139_v30 = vld [vmem:[%s3817_s9 + $0x80] sm:$0xff]  }
 0x6b3   : > { %2991 = vmatprep.mubr.msk.bf16.mxu1 %vm3208_vm1, %v3207_v20  ;;  %2984 = vmatpush3.bf16.msra.mxu1 %v3135_v57  ;;  %v3147_v57 = vld [vmem:[%s3817_s9 + $0xd0] sm:$0xff]  }
 0x6b4   : > { %2985 = vmatprep.subr.bf16.mxu1 %v3207_v20 }
 0x6b7   : > { %2986 = vmatpush3.bf16.msra.mxu1 %v3136_v58  ;;  %v3148_v58 = vld [vmem:[%s3817_s9 + $0xb8] sm:$0xff]  }
 0x6b8   : > { %2987 = vmatprep.subr.bf16.mxu1 %v3207_v20 }
 0x6bb   : > { %2988 = vmatpush3.bf16.msra.mxu1 %v3137_v7 }
 0x6bc   : > { %2989 = vmatprep.subr.bf16.mxu1 %v3207_v20 }
 0x6bf   : > { %2990 = vmatpush3.bf16.msra.mxu1 %v3138_v8 }
 0x6c0   : > { %3015 = vmatprep.subr.bf16.mxu1 %v3207_v20 }
 0x785   : > { %v1413_v36 = vpop.f32.mrb[20].mxu1 }
 0x786   : > { %v1414_v39 = vadd.f32 %v1413_v36, %v1363_v35  ;;  %v2973_v41 = vpop.f32.mrb[21].mxu1  ;;  %v1593_v36 = vsub.s32 7, %v3341_v22 }
 0x787   : > { %v1416_v42 = vpop.f32.mrb[22].mxu1 }
 0x788   : > { %v2974_v43 = vpop.f32.mrb[23].mxu1  ;;  %v1419_v44 = vadd.f32 %v1414_v39, %v3456_v37  ;;  %v3134_v37 = vld [vmem:[%s3816_s8 + $0x18] sm:$0xff]   ;;  %v3590_v39 = vld [vmem:[%s3818_s10 + $0x8] sm:$0xff]  ;;  %v1594_v41 = vrot.slane %v3483_v47, %v1593_v36  ;;  %v3143_v47 = vld [vmem:[%s3817_s9 + $0xa0] sm:$0xff]  }
 0x789   : > { %2978 = vmatpush3.bf16.msra.mxu0 %v3134_v37  ;;  %v3146_v37 = vld [vmem:[%s3817_s9 + $0xb0] sm:$0xff]  }
 0x78a   : > { %v1420_v45 = vsel %vm657_vm0, %v1419_v44, 0.0  ;;  %2995 = vmatprep.subr.bf16.mxu0 %v3207_v20 }
 0x78b   : > { %1421 = vadd.xlane.f32.xlu1 %v1420_v45 }
 0x818   : > { %v1422_v48 = vpop.xlane.xlu1 %1421 }
 0x819   : > { %v1424_v49 = vmul.f32 0.03125, %v1422_v48 }
 0x81b   : > { %v1425_v50 = vsub.f32 %v1419_v44, %v1424_v49  ;;  %v1599_v44 = vrot.slane %v3590_v39, %v3344_v23  ;;  %v3141_v49 = vld [vmem:[%s3817_s9 + $0x90] sm:$0xff]  }
 0x81d   : > { %v1426_v51 = vmul.f32 %v1425_v50, %v1425_v50 }
 0x81f   : > { %v1427_v54 = vsel %vm657_vm0, %v1426_v51, 0.0  ;;  %v3142_v51 = vld [vmem:[%s3817_s9 + $0x98] sm:$0xff]  }
 0x820   : > { %1428 = vadd.xlane.f32.xlu1 %v1427_v54  ;;  %v3144_v54 = vld [vmem:[%s3817_s9 + $0xa8] sm:$0xff]  }
 0x8ad   : > { %v1429_v59 = vpop.xlane.xlu1 %1428 }
 0x8ae   : > { %v1430_v60 = vmul.f32 0.03125, %v1429_v59  ;;  %v3149_v59 = vld [vmem:[%s3817_s9 + $0xd8] sm:$0xff]  }
 0x8b0   : > { %v1431_v40 = vadd.f32 1e-05, %v1430_v60 }
 0x8b2   : > { %3166 = vrsqrt.f32 %v1431_v40 }
 0x8bc   : > { %v3167_v0 = vpop.eup %3166 }
 0x8bd   : > { %v1433_v38 = vmul.f32 %v3167_v0, %v1425_v50 }
 0x8bf   : > { %v1438_v4 = vmul.f32 %v1437_v63, %v1433_v38 }
 0x8c1   : > { %v1443_v5 = vadd.f32 %v1442_v1, %v1438_v4  ;;  %v2741_v1 = vsel %vm1674_vm5, 1.0, %v3207_v20 }
 0x8c3   : > { %v1444_v6 = vpack.c.bf16 %v1443_v5, %v1443_v5 }
 0x8c5   : > { %2980 = vmatmul.mubr.msk.bf16.vlgmr.msra.gmra.mrb[40].mxu0 %vm657_vm0, %v1444_v6 }
 0x8c6   : > { %2999 = vmatprep.mubr.msk.bf16.mxu0 %vm3208_vm1, %v3207_v20  ;;  %2996 = vmatpush3.bf16.msra.mxu0 %v3139_v30 }
 0x8c7   : > { %2997 = vmatprep.subr.bf16.mxu0 %v3207_v20 }
 0x8ca   : > { %2998 = vmatpush3.bf16.msra.mxu0 %v3140_v31 }
 0x8cb   : > { %3003 = vmatprep.subr.bf16.mxu0 %v3207_v20 }
 0x998   : > { %v1498_v10 = vpop.f32.mrb[40].mxu0 }
 0x999   : > { %v1499_v53 = vadd.f32 %v1498_v10, %v1448_v9  ;;  %v2981_v11 = vpop.f32.mrb[41].mxu0  ;;  %v1759_v9 = vld [vmem:[%s3815_s7] sm:$0xff] }
 0x99a   : > { %v1501_v12 = vpop.f32.mrb[42].mxu0 }
 0x99b   : > { %v1504_v13 = vmax.f32 %v1499_v53, 0.0  ;;  %v2982_v14 = vpop.f32.mrb[43].mxu0  ;;  %v1760_v53 = vld [vmem:[%s3815_s7 + $0x8] sm:$0xff] }
 0x99d   : > { %v1505_v52 = vpack.c.bf16 %v1504_v13, %v1504_v13 }
 0x99f   : > { %2992 = vmatmul.mubr.msk.bf16.vlgmr.msra.gmra.mrb[24].mxu1 %vm997_vm2, %v1505_v52  ;;  %v3150_v52 = vld [vmem:[%s3817_s9 + $0xc0] sm:$0xff]  }
 0x9a0   : > { %3019 = vmatprep.mubr.msk.bf16.mxu1 %vm3208_vm1, %v3207_v20  ;;  %3016 = vmatpush3.bf16.msra.mxu1 %v3146_v37 }
 0x9a1   : > { %3017 = vmatprep.subr.bf16.mxu1 %v3207_v20 }
 0x9a4   : > { %3018 = vmatpush3.bf16.msra.mxu1 %v3148_v58  ;;  %v1792_v58 = vld [vmem:[%s513_s29 + $0x8] sm:$0xff] }
 0x9a5   : > { %3023 = vmatprep.subr.bf16.mxu1 %v3207_v20 }
 0xa72   : > { %v1571_v21 = vpop.f32.mrb[24].mxu1 }
 0xa73   : > { %v1572_v24 = vadd.f32 %v1571_v21, %v1509_v19  ;;  %v2993_v26 = vpop.f32.mrb[25].mxu1  ;;  %v3151_v21 = vld [vmem:[%s3817_s9 + $0xc8] sm:$0xff]  }
 0xa74   : > { %v1574_v25 = vpop.f32.mrb[26].mxu1  ;;  %v1914_v26 = vrot.slane %v3590_v39, %v3521_v34 }
 0xa75   : > { %v2994_v2 = vpop.f32.mrb[27].mxu1  ;;  %v1577_v18 = vadd.f32 %v1572_v24, %v1443_v5  ;;  %v1797_v24 = vrot.slane %v3590_v39, %v3488_v56 }
 0xa77   : > { %v1578_v3 = vsel %vm657_vm0, %v1577_v18, 0.0 }
 0xa78   : > { %1579 = vadd.xlane.f32.xlu0 %v1578_v3 }
 0xb05   : > { %v1580_v16 = vpop.xlane.xlu0 %1579 }
 0xb06   : > { %v1581_v17 = vmul.f32 0.03125, %v1580_v16 }
 0xb08   : > { %v1582_v27 = vsub.f32 %v1577_v18, %v1581_v17 }
 0xb0a   : > { %v1583_v28 = vmul.f32 %v1582_v27, %v1582_v27 }
 0xb0c   : > { %v1584_v29 = vsel %vm657_vm0, %v1583_v28, 0.0 }
 0xb0d   : > { %1585 = vadd.xlane.f32.xlu1 %v1584_v29 }
 0xb9a   : > { %v1586_v32 = vpop.xlane.xlu1 %1585 }
 0xb9b   : > { %v1587_v33 = vmul.f32 0.03125, %v1586_v32 }
 0xb9d   : > { %v1588_v35 = vadd.f32 1e-05, %v1587_v33 }
 0xb9f   : > { %3168 = vrsqrt.f32 %v1588_v35 }
 0xba9   : > { %v3169_v42 = vpop.eup %3168 }
 0xbaa   : > { %v1590_v43 = vmul.f32 %v3169_v42, %v1582_v27 }
 0xbac   : > { %v1595_v45 = vmul.f32 %v1594_v41, %v1590_v43  ;;  %v1857_v41 = vrot.slane %v3590_v39, %v3478_v46 }
 0xbae   : > { %v1600_v48 = vadd.f32 %v1599_v44, %v1595_v45 }
 0xbb0   : > { %v1605_v50 = vpack.c.bf16 %v1600_v48, %v1600_v48 }
 0xbb2   : > { %3000 = vmatmul.mubr.msk.bf16.vlgmr.msra.gmra.mrb[44].mxu0 %vm657_vm0, %v1605_v50 }
 0xbb3   : > { %3004 = vmatpush3.bf16.msra.mxu0 %v3141_v49  ;;  %3011 = vmatprep.mubr.msk.bf16.mxu0 %vm3208_vm1, %v3207_v20 }
 0xbb4   : > { %3005 = vmatprep.subr.bf16.mxu0 %v3207_v20 }
 0xbb7   : > { %3006 = vmatpush3.bf16.msra.mxu0 %v3142_v51 }
 0xbb8   : > { %3007 = vmatprep.subr.bf16.mxu0 %v3207_v20 }
 0xbbb   : > { %3008 = vmatpush3.bf16.msra.mxu0 %v3143_v47 }
 0xbbc   : > { %3009 = vmatprep.subr.bf16.mxu0 %v3207_v20 }
 0xbbf   : > { %3010 = vmatpush3.bf16.msra.mxu0 %v3144_v54  ;;  %v1791_v54 = vld [vmem:[%s513_s29] sm:$0xff] }
 0xbc0   : > { %3031 = vmatprep.subr.bf16.mxu0 %v3207_v20 }
 0xbc2   : > { %3012 = vmatmul.mubr.msk.bf16.vlgmr.msra.gmra.mrb[48].mxu0 %vm997_vm2, %v3145_v55 }
 0xbc3   : > { %3035 = vmatprep.mubr.msk.bf16.mxu0 %vm3208_vm1, %v3207_v20  ;;  %3032 = vmatpush3.bf16.msra.mxu0 %v3147_v57 }
 0xbc4   : > { %3033 = vmatprep.subr.bf16.mxu0 %v3207_v20 }
 0xbc7   : > { %3034 = vmatpush3.bf16.msra.mxu0 %v3149_v59 }
 0xbc8   : > { %3045 = vmatprep.subr.bf16.mxu0 %v3207_v20 }
 0xc85   : > { %v1655_v60 = vpop.f32.mrb[44].mxu0 }
 0xc86   : > { %v3001_v40 = vpop.f32.mrb[45].mxu0  ;;  %v1683_v38 = vrot.slane %v1655_v60, %v3344_v23 }
 0xc87   : > { %v1658_v63 = vpop.f32.mrb[46].mxu0 }
 0xc88   : > { %v3002_v0 = vpop.f32.mrb[47].mxu0  ;;  %v1684_v4 = vmul.f32 %v2741_v1, %v1683_v38  ;;  %v1685_v8 = vmul.f32 0.0, %v1683_v38 }
 0xc95   : > { %v1752_v5 = vpop.f32.mrb[48].mxu0 }
 0xc96   : > { %v1753_v6 = vadd.f32 %v1752_v5, %v1684_v4  ;;  %v3013_v7 = vpop.f32.mrb[49].mxu0 }
 0xc97   : > { %v1755_v10 = vpop.f32.mrb[50].mxu0 }
 0xc98   : > { %v1756_v11 = vadd.f32 %v1755_v10, %v1685_v8  ;;  %v3014_v12 = vpop.f32.mrb[51].mxu0  ;;  %v3644_v13 = vadd.f32 %v1759_v9, %v1753_v6 }
 0xc99   : > { %v3152_v12 = vld [vmem:[%s3817_s9 + $0xe0] sm:$0xff]  }
 0xc9a   : > { %v3646_v14 = vadd.f32 %v1760_v53, %v1756_v11 }
 0xc9c   : > { %v1793_v19 = vpack.c.bf16 %v3646_v14, %v3644_v13 }
 0xc9e   : > { %3020 = vmatmul.mubr.msk.bf16.vlgmr.msra.gmra.mrb[28].mxu1 %vm657_vm0, %v1793_v19  ;;  %3036 = vmatmul.mubr.msk.bf16.vlgmr.msra.gmra.mrb[52].mxu0 %vm657_vm0, %v1793_v19 }
 0xc9f   : > { %3024 = vmatpush3.bf16.msra.mxu1 %v3150_v52  ;;  %3027 = vmatprep.mubr.msk.bf16.mxu1 %vm3208_vm1, %v3207_v20 }
 0xca0   : > { %3025 = vmatprep.subr.bf16.mxu1 %v3207_v20  ;;  %3047 = vmatprep.mubr.msk.bf16.mxu0 %vm3208_vm1, %v3207_v20 }
 0xca3   : > { %3026 = vmatpush3.bf16.msra.mxu1 %v3151_v21 }
 0xca4   : > { %3039 = vmatprep.subr.bf16.mxu1 %v3207_v20 }
 0xca6   : > { %3028 = vmatmul.mubr.msk.bf16.vlgmr.msra.gmra.mrb[32].mxu1 %vm657_vm0, %v1793_v19 }
 0xca7   : > { %3041 = vmatprep.mubr.msk.bf16.mxu1 %vm3208_vm1, %v3207_v20 }
 0xd71   : > { %v1847_v25 = vpop.f32.mrb[28].mxu1  ;;  %v1961_v2 = vpop.f32.mrb[52].mxu0 }
 0xd72   : > { %v3021_v18 = vpop.f32.mrb[29].mxu1  ;;  %v3037_v3 = vpop.f32.mrb[53].mxu0  ;;  %v1848_v27 = vadd.f32 %v1847_v25, %v1797_v24  ;;  %v1962_v28 = vadd.f32 %v1961_v2, %v1914_v26 }
 0xd73   : > { %v1850_v16 = vpop.f32.mrb[30].mxu1  ;;  %v1964_v17 = vpop.f32.mrb[54].mxu0  ;;  %v3153_v18 = vld [vmem:[%s3817_s9 + $0xe8] sm:$0xff]  }
 0xd74   : > { %v1851_v29 = vadd.f32 %v1850_v16, %v1797_v24  ;;  %v1965_v30 = vadd.f32 %v1964_v17, %v1914_v26  ;;  %v3022_v31 = vpop.f32.mrb[31].mxu1  ;;  %v3038_v32 = vpop.f32.mrb[55].mxu0 }
 0xd76   : > { %v1968_v33 = vpack.c.bf16 %v1851_v29, %v1848_v27  ;;  %v2045_v35 = vpack.c.bf16 %v1965_v30, %v1962_v28  ;;  %v2094_v29 = vrot.slane %v3590_v39, %v1436_v61 }
 0xd78   : > { %3046 = vmatpush3.bf16.msra.mxu0 %v2045_v35 }
 0xd79   : > { %v1904_v42 = vpop.f32.mrb[32].mxu1  ;;  %3059 = vmatprep.subr.bf16.mxu0 %v3207_v20 }
 0xd7a   : > { %v3029_v43 = vpop.f32.mrb[33].mxu1  ;;  %v1905_v45 = vadd.f32 %v1904_v42, %v1857_v41 }
 0xd7b   : > { %v1907_v44 = vpop.f32.mrb[34].mxu1 }
 0xd7c   : > { %v1908_v48 = vadd.f32 %v1907_v44, %v1857_v41  ;;  %v3030_v49 = vpop.f32.mrb[35].mxu1 }
 0xd7e   : > { %v1969_v50 = vpack.c.bf16 %v1908_v48, %v1905_v45 }
 0xd80   : > { %v1974_v51 = vsel %vm657_vm0, %v1969_v50, 0 }
 0xd81   : > { %3040 = vmatpush3.bf16.xpose.msra.mxu1 %v1974_v51 }
 0xd82   : > { %3051 = vmatprep.subr.bf16.mxu1 %v3207_v20 }
 0xd88   : > { %3042 = vmatmul.mubr.msk.bf16.vlgmr.msra.gmra.mrb[36].mxu1 %vm657_vm0, %v1968_v33 }
 0xd89   : > { %3055 = vmatprep.mubr.msk.bf16.mxu1 %vm3208_vm1, %v3207_v20  ;;  %3052 = vmatpush3.bf16.msra.mxu1 %v3152_v12 }
 0xd8a   : > { %3053 = vmatprep.subr.bf16.mxu1 %v3207_v20 }
 0xd8d   : > { %3054 = vmatpush3.bf16.msra.mxu1 %v3153_v18 }
 0xd8e   : > { %3067 = vmatprep.subr.bf16.mxu1 %v3207_v20 }
 0xe5b   : > { %v2010_v47 = vpop.f32.mrb[36].mxu1 }
 0xe5c   : > { %v2017_v55 = vmul.f32 0.17677669, %v2010_v47  ;;  %v3043_v37 = vpop.f32.mrb[37].mxu1 }
 0xe5d   : > { %v2013_v57 = vpop.f32.mrb[38].mxu1 }
 0xe5e   : > { %v2018_v59 = vmul.f32 0.17677669, %v2013_v57  ;;  %v3044_v60 = vpop.f32.mrb[39].mxu1  ;;  %v2019_v40 = vadd.f32 %v2017_v55, %v1791_v54  ;;  %v3155_v57 = vld [vmem:[%s3816_s8 + $0x28] sm:$0xff]  }
 0xe60   : > { %v2022_v63 = vsel %vm2021_vm6, %v2019_v40, -inf  ;;  %v2020_v0 = vadd.f32 %v2018_v59, %v1792_v58  ;;  %v3156_v58 = vld [vmem:[%s3817_s9 + $0xf0] sm:$0xff]   ;;  %v3157_v59 = vld [vmem:[%s3817_s9 + $0xf8] sm:$0xff]  }
 0xe61   : > { %2023 = vmax.xlane.f32.xlu0 %v2022_v63 }
 0xe62   : > { %v2025_v38 = vsel %vm2021_vm6, %v2020_v0, -inf }
 0xe63   : > { %2026 = vmax.xlane.f32.xlu1 %v2025_v38 }
 0xeee   : > { %v2024_v1 = vpop.xlane.xlu0 %2023 }
 0xeef   : > { %v2028_v4 = vsub.f32 %v2019_v40, %v2024_v1 }
 0xef0   : > { %v2027_v5 = vpop.xlane.xlu1 %2026 }
 0xef1   : > { %v2030_v6 = vmul.f32 1.442695, %v2028_v4  ;;  %v2029_v7 = vsub.f32 %v2020_v0, %v2027_v5  ;;  %v2182_v4 = vrot.slane %v3590_v39, %v1441_v62  ;;  %v3158_v62 = vld [vmem:[%s3817_s9 + $0x100] sm:$0xff]  }
 0xef3   : > { %3170 = vpow2.f32 %v2030_v6  ;;  %v2032_v8 = vmul.f32 1.442695, %v2029_v7 }
 0xef5   : > { %3172 = vpow2.f32 %v2032_v8  ;;  %v2188_v8 = vrot.slane %v3590_v39, %v1508_v15  ;;  %v3159_v15 = vld [vmem:[%s3817_s9 + $0x108] sm:$0xff]  }
 0xefd   : > { %v3171_v9 = vpop.eup %3170 }
 0xefe   : > { %v2034_v10 = vsel %vm2021_vm6, %v3171_v9, 0.0 }
 0xeff   : > { %v3173_v53 = vpop.eup %3172  ;;  %2035 = vadd.xlane.f32.xlu0 %v2034_v10 }
 0xf00   : > { %v2037_v11 = vsel %vm2021_vm6, %v3173_v53, 0.0 }
 0xf01   : > { %2038 = vadd.xlane.f32.xlu1 %v2037_v11 }
 0xf8c   : > { %v2036_v52 = vpop.xlane.xlu0 %2035 }
 0xf8d   : > { %3174 = vrcp.f32 %v2036_v52 }
 0xf8e   : > { %v2039_v19 = vpop.xlane.xlu1 %2038 }
 0xf8f   : > { %3176 = vrcp.f32 %v2039_v19  ;;  %v3747_v19 = vld [vmem:[%s3819_s11] sm:$0xf] }
 0xf97   : > { %v3175_v21 = vpop.eup %3174 }
 0xf98   : > { %v2042_v26 = vmul.f32 %v3175_v21, %v3171_v9  ;;  %v2195_v21 = vrot.slane %v3747_v19, %v3478_v46 }
 0xf99   : > { %v3177_v24 = vpop.eup %3176 }
 0xf9a   : > { %v2043_v25 = vmul.f32 %v3177_v24, %v3173_v53 }
 0xf9c   : > { %v2044_v2 = vpack.c.bf16 %v2043_v25, %v2042_v26 }
 0xf9e   : > { %3048 = vmatmul.mubr.msk.bf16.vlgmr.msra.gmra.mrb[56].mxu0 %vm2021_vm6, %v2044_v2 }
 0xf9f   : > { %3063 = vmatprep.mubr.msk.bf16.mxu0 %vm3208_vm1, %v3207_v20 }
0x1071   : > { %v2083_v3 = vpop.f32.mrb[56].mxu0 }
0x1072   : > { %v3049_v16 = vpop.f32.mrb[57].mxu0 }
0x1073   : > { %v2086_v17 = vpop.f32.mrb[58].mxu0 }
0x1074   : > { %v2090_v27 = vpack.c.bf16 %v2086_v17, %v2083_v3  ;;  %v3050_v28 = vpop.f32.mrb[59].mxu0 }
0x1075   : > { %v2258_v28 = vrot.slane %v3590_v39, %v1593_v36 }
0x1076   : > { %3056 = vmatmul.mubr.msk.bf16.vlgmr.msra.gmra.mrb[40].mxu1 %vm657_vm0, %v2090_v27 }
0x1077   : > { %3075 = vmatprep.mubr.msk.bf16.mxu1 %vm3208_vm1, %v3207_v20  ;;  %3068 = vmatpush3.bf16.msra.mxu1 %v3156_v58  ;;  %v523_v58 = vld [vmem:[%s3818_s10 + $0x10] sm:$0xf] }
0x1078   : > { %3069 = vmatprep.subr.bf16.mxu1 %v3207_v20 }
0x107b   : > { %3070 = vmatpush3.bf16.msra.mxu1 %v3157_v59  ;;  %v2358_v59 = vrot.slane %v523_v58, %v3344_v23 }
0x107c   : > { %3071 = vmatprep.subr.bf16.mxu1 %v3207_v20 }
0x107f   : > { %3072 = vmatpush3.bf16.msra.mxu1 %v3158_v62 }
0x1080   : > { %3073 = vmatprep.subr.bf16.mxu1 %v3207_v20 }
0x1083   : > { %3074 = vmatpush3.bf16.msra.mxu1 %v3159_v15 }
0x1149   : > { %v2144_v30 = vpop.f32.mrb[40].mxu1 }
0x114a   : > { %v2145_v31 = vadd.f32 %v2144_v30, %v2094_v29  ;;  %v3057_v32 = vpop.f32.mrb[41].mxu1 }
0x114b   : > { %v2147_v33 = vpop.f32.mrb[42].mxu1 }
0x114c   : > { %v2148_v35 = vadd.f32 %v2147_v33, %v2094_v29  ;;  %v3058_v41 = vpop.f32.mrb[43].mxu1  ;;  %v2151_v42 = vadd.f32 %v2145_v31, %v3644_v13 }
0x114e   : > { %v2153_v43 = vsel %vm657_vm0, %v2151_v42, 0.0  ;;  %v2152_v44 = vadd.f32 %v2148_v35, %v3646_v14  ;;  %v3154_v14 = vld [vmem:[%s3816_s8 + $0x20] sm:$0xff]  }
0x114f   : > { %2154 = vadd.xlane.f32.xlu0 %v2153_v43  ;;  %3060 = vmatpush3.bf16.msra.mxu0 %v3154_v14 }
0x1150   : > { %v2156_v45 = vsel %vm657_vm0, %v2152_v44, 0.0  ;;  %3061 = vmatprep.subr.bf16.mxu0 %v3207_v20 }
0x1151   : > { %2157 = vadd.xlane.f32.xlu1 %v2156_v45 }
0x1153   : > { %3062 = vmatpush3.bf16.msra.mxu0 %v3155_v57 }
0x1154   : > { %3079 = vmatprep.subr.bf16.mxu0 %v3207_v20 }
0x11dc   : > { %v2155_v48 = vpop.xlane.xlu0 %2154 }
0x11dd   : > { %v2159_v49 = vmul.f32 0.03125, %v2155_v48 }
0x11de   : > { %v2158_v50 = vpop.xlane.xlu1 %2157 }
0x11df   : > { %v2161_v61 = vsub.f32 %v2151_v42, %v2159_v49  ;;  %v2160_v51 = vmul.f32 0.03125, %v2158_v50 }
0x11e1   : > { %v2162_v47 = vsub.f32 %v2152_v44, %v2160_v51  ;;  %v2163_v54 = vmul.f32 %v2161_v61, %v2161_v61 }
0x11e3   : > { %v2165_v55 = vsel %vm657_vm0, %v2163_v54, 0.0  ;;  %v2164_v37 = vmul.f32 %v2162_v47, %v2162_v47 }
0x11e4   : > { %2166 = vadd.xlane.f32.xlu0 %v2165_v55 }
0x11e5   : > { %v2168_v13 = vsel %vm657_vm0, %v2164_v37, 0.0 }
0x11e6   : > { %2169 = vadd.xlane.f32.xlu1 %v2168_v13 }
0x1271   : > { %v2167_v60 = vpop.xlane.xlu0 %2166 }
0x1272   : > { %v2171_v40 = vmul.f32 0.03125, %v2167_v60 }
0x1273   : > { %v2170_v63 = vpop.xlane.xlu1 %2169 }
0x1274   : > { %v2173_v0 = vadd.f32 1e-05, %v2171_v40  ;;  %v2172_v38 = vmul.f32 0.03125, %v2170_v63  ;;  %v2364_v63 = vrot.slane %v523_v58, %v3488_v56 }
0x1276   : > { %3178 = vrsqrt.f32 %v2173_v0  ;;  %v2174_v1 = vadd.f32 1e-05, %v2172_v38 }
0x1278   : > { %3180 = vrsqrt.f32 %v2174_v1 }
0x1280   : > { %v3179_v5 = vpop.eup %3178 }
0x1281   : > { %v2177_v6 = vmul.f32 %v3179_v5, %v2161_v61 }
0x1282   : > { %v3181_v7 = vpop.eup %3180 }
0x1283   : > { %v2183_v9 = vmul.f32 %v2182_v4, %v2177_v6  ;;  %v2178_v10 = vmul.f32 %v3181_v7, %v2162_v47 }
0x1285   : > { %v2184_v53 = vmul.f32 %v2182_v4, %v2178_v10  ;;  %v2189_v11 = vadd.f32 %v2188_v8, %v2183_v9 }
0x1287   : > { %v2190_v12 = vadd.f32 %v2188_v8, %v2184_v53 }
0x1289   : > { %v2191_v52 = vpack.c.bf16 %v2190_v12, %v2189_v11 }
0x128b   : > { %3064 = vmatmul.mubr.msk.bf16.vlgmr.msra.gmra.mrb[60].mxu0 %vm657_vm0, %v2191_v52 }
0x128c   : > { %3083 = vmatprep.mubr.msk.bf16.mxu0 %vm3208_vm1, %v3207_v20 }
0x135e   : > { %v2245_v24 = vpop.f32.mrb[60].mxu0 }
0x135f   : > { %v2246_v26 = vadd.f32 %v2245_v24, %v2195_v21  ;;  %v3065_v25 = vpop.f32.mrb[61].mxu0  ;;  %v3161_v24 = vld [vmem:[%s3816_s8 + $0x38] sm:$0xff]  }
0x1360   : > { %v2248_v2 = vpop.f32.mrb[62].mxu0 }
0x1361   : > { %v2249_v18 = vadd.f32 %v2248_v2, %v2195_v21  ;;  %v3066_v3 = vpop.f32.mrb[63].mxu0  ;;  %v2252_v16 = vmax.f32 %v2246_v26, 0.0  ;;  %v3160_v21 = vld [vmem:[%s3816_s8 + $0x30] sm:$0xff]  }
0x1362   : > { %3080 = vmatpush3.bf16.msra.mxu0 %v3160_v21 }
0x1363   : > { %v2253_v17 = vmax.f32 %v2249_v18, 0.0  ;;  %3081 = vmatprep.subr.bf16.mxu0 %v3207_v20  ;;  %v2402_v20 = vrot.slane %v523_v58, %v3521_v34 }
0x1365   : > { %v2254_v27 = vpack.c.bf16 %v2253_v17, %v2252_v16  ;;  %v2396_v17 = vrot.slane %v523_v58, %v3478_v46 }
0x1366   : > { %3082 = vmatpush3.bf16.msra.mxu0 %v3161_v24 }
0x1367   : > { %3076 = vmatmul.mubr.msk.bf16.vlgmr.msra.gmra.mrb[44].mxu1 %vm997_vm2, %v2254_v27 }
0x143a   : > { %v2320_v29 = vpop.f32.mrb[44].mxu1 }
0x143b   : > { %v2321_v30 = vadd.f32 %v2320_v29, %v2258_v28  ;;  %v3077_v31 = vpop.f32.mrb[45].mxu1 }
0x143c   : > { %v2323_v32 = vpop.f32.mrb[46].mxu1 }
0x143d   : > { %v2324_v33 = vadd.f32 %v2323_v32, %v2258_v28  ;;  %v3078_v35 = vpop.f32.mrb[47].mxu1  ;;  %v2327_v41 = vadd.f32 %v2321_v30, %v2189_v11 }
0x143f   : > { %v2329_v42 = vsel %vm657_vm0, %v2327_v41, 0.0  ;;  %v2328_v43 = vadd.f32 %v2324_v33, %v2190_v12 }
0x1440   : > { %2330 = vadd.xlane.f32.xlu0 %v2329_v42  ;;  %v2413_v42 = vrot.slane %v3747_v19, %v3521_v34  ;;  %v2470_v19 = vld [vmem:[%s508_s28] sm:$0xff] }
0x1441   : > { %v2332_v44 = vsel %vm657_vm0, %v2328_v43, 0.0 }
0x1442   : > { %2333 = vadd.xlane.f32.xlu1 %v2332_v44 }
0x14cd   : > { %v2331_v45 = vpop.xlane.xlu0 %2330 }
0x14ce   : > { %v2335_v48 = vmul.f32 0.03125, %v2331_v45 }
0x14cf   : > { %v2334_v49 = vpop.xlane.xlu1 %2333 }
0x14d0   : > { %v2337_v22 = vsub.f32 %v2327_v41, %v2335_v48  ;;  %v2336_v50 = vmul.f32 0.03125, %v2334_v49 }
0x14d2   : > { %v2338_v36 = vsub.f32 %v2328_v43, %v2336_v50  ;;  %v2339_v39 = vmul.f32 %v2337_v22, %v2337_v22 }
0x14d4   : > { %v2341_v61 = vsel %vm657_vm0, %v2339_v39, 0.0  ;;  %v2340_v51 = vmul.f32 %v2338_v36, %v2338_v36 }
0x14d5   : > { %2342 = vadd.xlane.f32.xlu0 %v2341_v61 }
0x14d6   : > { %v2344_v47 = vsel %vm657_vm0, %v2340_v51, 0.0 }
0x14d7   : > { %2345 = vadd.xlane.f32.xlu1 %v2344_v47 }
0x1562   : > { %v2343_v54 = vpop.xlane.xlu0 %2342 }
0x1563   : > { %v2347_v55 = vmul.f32 0.03125, %v2343_v54 }
0x1564   : > { %v2346_v37 = vpop.xlane.xlu1 %2345 }
0x1565   : > { %v2349_v13 = vadd.f32 1e-05, %v2347_v55  ;;  %v2348_v14 = vmul.f32 0.03125, %v2346_v37  ;;  %v2471_v55 = vld [vmem:[%s508_s28 + $0x8] sm:$0xff] }
0x1567   : > { %3182 = vrsqrt.f32 %v2349_v13  ;;  %v2350_v57 = vadd.f32 1e-05, %v2348_v14 }
0x1569   : > { %3184 = vrsqrt.f32 %v2350_v57 }
0x1571   : > { %v3183_v60 = vpop.eup %3182 }
0x1572   : > { %v2353_v40 = vmul.f32 %v3183_v60, %v2337_v22 }
0x1573   : > { %v3185_v0 = vpop.eup %3184 }
0x1574   : > { %v2359_v38 = vmul.f32 %v2358_v59, %v2353_v40  ;;  %v2354_v1 = vmul.f32 %v3185_v0, %v2338_v36  ;;  %v2472_v40 = vsel %vm997_vm2, %v2470_v19, 0.0 }
0x1576   : > { %v2365_v4 = vadd.f32 %v2364_v63, %v2359_v38  ;;  %v2360_v5 = vmul.f32 %v2358_v59, %v2354_v1 }
0x1578   : > { %v2367_v6 = vsel %vm657_vm0, %v2365_v4, 0.0  ;;  %v2366_v7 = vadd.f32 %v2364_v63, %v2360_v5  ;;  %v2475_v63 = vsel %vm997_vm2, %v2471_v55, 0.0 }
0x1579   : > { %2368 = vadd.xlane.f32.xlu0 %v2367_v6 }
0x157a   : > { %v2370_v8 = vsel %vm657_vm0, %v2366_v7, 0.0 }
0x157b   : > { %2371 = vadd.xlane.f32.xlu1 %v2370_v8 }
0x1606   : > { %v2369_v9 = vpop.xlane.xlu0 %2368 }
0x1607   : > { %v2373_v10 = vmul.f32 0.03125, %v2369_v9 }
0x1608   : > { %v2372_v53 = vpop.xlane.xlu1 %2371 }
0x1609   : > { %v2375_v23 = vsub.f32 %v2365_v4, %v2373_v10  ;;  %v2374_v11 = vmul.f32 0.03125, %v2372_v53 }
0x160b   : > { %v2376_v12 = vsub.f32 %v2366_v7, %v2374_v11  ;;  %v2377_v52 = vmul.f32 %v2375_v23, %v2375_v23 }
0x160d   : > { %v2379_v56 = vsel %vm657_vm0, %v2377_v52, 0.0  ;;  %v2378_v62 = vmul.f32 %v2376_v12, %v2376_v12 }
0x160e   : > { %2380 = vadd.xlane.f32.xlu0 %v2379_v56 }
0x160f   : > { %v2382_v15 = vsel %vm657_vm0, %v2378_v62, 0.0 }
0x1610   : > { %2383 = vadd.xlane.f32.xlu1 %v2382_v15 }
0x169b   : > { %v2381_v26 = vpop.xlane.xlu0 %2380 }
0x169c   : > { %v2385_v25 = vmul.f32 0.03125, %v2381_v26 }
0x169d   : > { %v2384_v2 = vpop.xlane.xlu1 %2383 }
0x169e   : > { %v2387_v18 = vadd.f32 1e-05, %v2385_v25  ;;  %v2386_v3 = vmul.f32 0.03125, %v2384_v2 }
0x16a0   : > { %3186 = vrsqrt.f32 %v2387_v18  ;;  %v2388_v16 = vadd.f32 1e-05, %v2386_v3 }
0x16a2   : > { %3188 = vrsqrt.f32 %v2388_v16 }
0x16aa   : > { %v3187_v27 = vpop.eup %3186 }
0x16ab   : > { %v2391_v28 = vmul.f32 %v3187_v27, %v2375_v23 }
0x16ac   : > { %v3189_v29 = vpop.eup %3188 }
0x16ad   : > { %v2397_v30 = vmul.f32 %v2396_v17, %v2391_v28  ;;  %v2392_v31 = vmul.f32 %v3189_v29, %v2376_v12 }
0x16af   : > { %v2398_v32 = vmul.f32 %v2396_v17, %v2392_v31  ;;  %v2403_v33 = vadd.f32 %v2402_v20, %v2397_v30 }
0x16b1   : > { %v2404_v35 = vadd.f32 %v2402_v20, %v2398_v32 }
0x16b3   : > { %v2409_v41 = vpack.c.bf16 %v2404_v35, %v2403_v33 }
0x16b5   : > { %3084 = vmatmul.mubr.msk.bf16.vlgmr.msra.gmra.mrb[64].mxu0 %vm657_vm0, %v2409_v41 }
0x1788   : > { %v2463_v43 = vpop.f32.mrb[64].mxu0 }
0x1789   : > { %v2464_v44 = vadd.f32 %v2463_v43, %v2413_v42  ;;  %v3085_v45 = vpop.f32.mrb[65].mxu0 }
0x178a   : > { %v2466_v46 = vpop.f32.mrb[66].mxu0 }
0x178b   : > { %v2467_v48 = vadd.f32 %v2466_v46, %v2413_v42  ;;  %v3086_v49 = vpop.f32.mrb[67].mxu0  ;;  %v2478_v22 = vsel %vm997_vm2, %v2464_v44, -inf  ;;  %v2502_v13 = vmul.f32 %v2470_v19, %v2464_v44 }
0x178c   : > { %2479 = vmax.xlane.f32.xlu0 %v2478_v22 }
0x178d   : > { %v2481_v50 = vsel %vm997_vm2, %v2467_v48, -inf  ;;  %v2503_v58 = vmul.f32 %v2471_v55, %v2467_v48  ;;  %v2504_v59 = vsel %vm997_vm2, %v2502_v13, 0.0 }
0x178e   : > { %2482 = vmax.xlane.f32.xlu1 %v2481_v50 }
0x178f   : > { %v2507_v60 = vsel %vm997_vm2, %v2503_v58, 0.0 }
0x1819   : > { %v2480_v36 = vpop.xlane.xlu0 %2479 }
0x181a   : > { %v2484_v39 = vsub.f32 %v2464_v44, %v2480_v36 }
0x181b   : > { %v2483_v61 = vpop.xlane.xlu1 %2482 }
0x181c   : > { %v2486_v51 = vmul.f32 1.442695, %v2484_v39  ;;  %v2485_v47 = vsub.f32 %v2467_v48, %v2483_v61 }
0x181e   : > { %3190 = vpow2.f32 %v2486_v51  ;;  %v2488_v34 = vmul.f32 1.442695, %v2485_v47 }
0x1820   : > { %3192 = vpow2.f32 %v2488_v34 }
0x1828   : > { %v3191_v54 = vpop.eup %3190 }
0x1829   : > { %v2490_v37 = vsel %vm997_vm2, %v3191_v54, 0.0 }
0x182a   : > { %v3193_v14 = vpop.eup %3192  ;;  %2491 = vadd.xlane.f32.xlu0 %v2490_v37 }
0x182b   : > { %v2493_v57 = vsel %vm997_vm2, %v3193_v14, 0.0 }
0x182c   : > { %2494 = vadd.xlane.f32.xlu1 %v2493_v57 }
0x182e   : > { %2505 = vadd.xlane.f32.xlu0 %v2504_v59 }
0x1830   : > { %2508 = vadd.xlane.f32.xlu1 %v2507_v60 }
0x1832   : > { %2473 = vadd.xlane.f32.xlu0 %v2472_v40 }
0x1834   : > { %2476 = vadd.xlane.f32.xlu1 %v2475_v63 }
0x18b7   : > { %v2492_v0 = vpop.xlane.xlu0 %2491 }
0x18b8   : > { %3194 = vlog2.f32 %v2492_v0 }
0x18b9   : > { %v2495_v38 = vpop.xlane.xlu1 %2494 }
0x18ba   : > { %3196 = vlog2.f32 %v2495_v38 }
0x18bb   : > { %v2506_v1 = vpop.xlane.xlu0 %2505 }
0x18bd   : > { %v2509_v4 = vpop.xlane.xlu1 %2508 }
0x18bf   : > { %v2474_v5 = vpop.xlane.xlu0 %2473 }
0x18c0   : > { %v2530_v6 = vsel %vm2514_vm7, %v2474_v5, 0.0 }
0x18c1   : > { %v2477_v7 = vpop.xlane.xlu1 %2476 }
0x18c2   : > { %v3195_v8 = vpop.eup %3194  ;;  %v2531_v9 = vsel %vm2514_vm7, %v2477_v7, 0.0 }
0x18c3   : > { %v2497_v10 = vmul.f32 0.6931472, %v3195_v8  ;;  %v2532_v53 = vadd.f32 %v2531_v9, %v2530_v6 }
0x18c4   : > { %v3197_v23 = vpop.eup %3196 }
0x18c5   : > { %v2499_v11 = vmul.f32 0.6931472, %v3197_v23  ;;  %v2500_v12 = vadd.f32 %v2497_v10, %v2480_v36  ;;  %2533 = vadd.xlane.f32.xlu1 %v2532_v53 }
0x18c7   : > { %v2510_v52 = vsub.f32 %v2500_v12, %v2506_v1  ;;  %v2501_v56 = vadd.f32 %v2499_v11, %v2483_v61 }
0x18c9   : > { %v2511_v62 = vsub.f32 %v2501_v56, %v2509_v4  ;;  %v2512_v15 = vmul.f32 %v2510_v52, %v2474_v5 }
0x18cb   : > { %v2513_v21 = vmul.f32 %v2511_v62, %v2477_v7  ;;  %v2515_v24 = vsel %vm2514_vm7, %v2512_v15, 0.0 }
0x18cd   : > { %v2516_v26 = vsel %vm2514_vm7, %v2513_v21, 0.0 }
0x18ce   : > { %v2517_v25 = vadd.f32 %v2516_v26, %v2515_v24 }
0x18d0   : > { %2518 = vadd.xlane.f32.xlu0 %v2517_v25 }
0x1952   : > { %v2534_v2 = vpop.xlane.xlu1 %2533 }
0x1953   : > { %v2535_v18 = vrot.slane %v2534_v2, 4 }
0x1955   : > { %v2536_v3 = vadd.f32 %v2535_v18, %v2534_v2 }
0x1957   : > { %v2537_v16 = vrot.slane %v2536_v3, 2 }
0x1959   : > { %v2538_v29 = vadd.f32 %v2537_v16, %v2536_v3 }
0x195b   : > { %v2539_v31 = vrot.slane %v2538_v29, 1 }
0x195d   : > { %v2519_v17 = vpop.xlane.xlu0 %2518  ;;  %v2540_v35 = vadd.f32 %v2539_v31, %v2538_v29 }
0x195e   : > { %v2520_v27 = vrot.slane %v2519_v17, 4 }
0x1960   : > { %v2521_v28 = vadd.f32 %v2520_v27, %v2519_v17 }
0x1962   : > { %v2522_v20 = vrot.slane %v2521_v28, 2 }
0x1964   : > { %v2523_v30 = vadd.f32 %v2522_v20, %v2521_v28 }
0x1966   : > { %v2524_v32 = vrot.slane %v2523_v30, 1 }
0x1968   : > { %v2525_v33 = vadd.f32 %v2524_v32, %v2523_v30 }
0x196a   : > { %3087 = vpush %v2525_v33 }
0x196b   : > { %3089 = vpush %v2540_v35 }
0x199b   : > { %s3088_s14 = spop %3087 }
0x199c   : > { %v2527_v41 = vstv %s3088_s14  ;;  %s3090_s18 = spop %3089 }
0x199d   : > { %2529 = vst.msk [vmem:[%s516_s30] sm:$0x1] %vm2528_vm8, %v2527_v41  ;;  %v2542_v42 = vstv %s3090_s18 }
0x199e   : > { %2543 = vst.msk [vmem:[%s519_s17] sm:$0x1] %vm2528_vm8, %v2542_v42 }
0x199f PF: > { %s24_s25 = sadd.s32 1, %s3205_s25  }
0x19a0   : > { %p21_p4 = scmp.ge.s32.totalorder %s24_s25, 4  }
0x19a2   :  { %23 = sbr.rel (!%p21_p4) target bundleno = 1 (0x1), region = 122 }

</bundles_post_ra>
